<compile_context>
chip_gen: v5e
topology: v5e:2x2
jax: 0.10.0
libtpu: 0.0.40
codegen_flags: <defaults>
</compile_context>

<pallas_src>
import functools

import jax
import jax.numpy as jnp
from jax.experimental import pallas as pl
from jax.experimental.pallas import tpu as pltpu

NUM_CLASSES = 2


def head_kernel(x_ref, w1_ref, shift_ref, w2_ref, b2_ref, o_ref, *, compute_dtype):
    # Cast x to the compute dtype in-kernel (no-op for f32 path); hidden under
    # the x-slab DMA.
    x = x_ref[...].astype(compute_dtype)
    # linear_fuse.conv (1x1, C->C, bias-free) with BN scale pre-folded into W1.
    h = jnp.dot(w1_ref[...], x, preferred_element_type=jnp.float32)
    # folded BatchNorm shift + ReLU6 (VPU work, free under DMA on v6e/v7x).
    h = jnp.clip(h + shift_ref[...], 0.0, 6.0)
    # TODO(synk): Dropout2d(0.1) is identity in eval mode; training-mode
    # channel dropout is not implemented here.
    # Feed the second MXU pass compute_dtype operands too (h is bounded in
    # [0,6] post-ReLU6, so bf16 rounding is benign); accumulate in f32.
    h = h.astype(compute_dtype)
    # conv_seg: 1x1 conv (C -> 2, with bias); output is lane-dense (2, tile_m).
    o_ref[...] = (
        jnp.dot(w2_ref[...], h, preferred_element_type=jnp.float32) + b2_ref[...]
    )


def _pick_tile(hw_pad, n_batch, cap=4096):
    """Largest multiple of 128 that divides hw_pad (which is itself a multiple
    of 128), capped; then shrink if needed so the grid has >=2 steps (v7x
    dual-TC)."""
    def largest_div(limit):
        best = 128
        t = 128
        while t <= min(hw_pad, limit):
            if hw_pad % t == 0:
                best = t
            t += 128
        return best

    tile = largest_div(cap)
    # Guarantee >=2 grid steps so both v7x TensorCores get work when possible.
    if n_batch * (hw_pad // tile) < 2 and hw_pad >= 256:
        tile = largest_div(hw_pad // 2)
    return tile


def head_forward(x_nchw, params, *, compute_dtype=jnp.bfloat16):
    """x_nchw: (N, C, H, W) float32 -> (N, 2, H, W) float32."""
    N, C, H, W = x_nchw.shape
    HW = H * W

    # Free reshape to (N, C, H*W); NO dtype cast here (cast happens in-kernel).
    x3d = x_nchw.reshape(N, C, HW)

    # Pad the pixel axis to a multiple of 128 so every block is lane-dense and
    # pipelined (only triggers when HW % 128 != 0).
    HW_pad = pl.cdiv(HW, 128) * 128
    if HW_pad != HW:
        x3d = jnp.pad(x3d, ((0, 0), (0, 0), (0, HW_pad - HW)))

    tile_m = _pick_tile(HW_pad, N)
    n_tiles = HW_pad // tile_m

    # Fold BN scale into the fuse weight (row-wise out-channel scale) BEFORE
    # the dtype cast; the shift is the only post-matmul add left in the kernel.
    w1 = (params["w_fuse"] * params["bn_scale"][:, None]).astype(compute_dtype)
    shift = params["bn_shift"][:, None].astype(jnp.float32)        # (C, 1)
    w2 = params["w_seg"].astype(compute_dtype)                     # (2, C)
    b2 = params["b_seg"][:, None].astype(jnp.float32)              # (2, 1)

    # VMEM budget: double-buffered x slab + double-buffered out block +
    # resident weights + f32 h intermediate; generous headroom, capped well
    # below v7x's 64 MiB physical VMEM.
    itemsize_x = x3d.dtype.itemsize
    itemsize_w = jnp.dtype(compute_dtype).itemsize
    vmem_bytes = (
        2 * C * tile_m * itemsize_x          # x slab, double-buffered
        + 2 * NUM_CLASSES * tile_m * 4       # out block, double-buffered
        + C * C * itemsize_w                 # w1
        + NUM_CLASSES * C * itemsize_w       # w2
        + (C + NUM_CLASSES) * 4              # shift, b2
        + C * tile_m * 4                     # f32 h intermediate
    )
    vmem_limit = min(max(2 * vmem_bytes, 16 << 20), 48 << 20)

    kernel = functools.partial(head_kernel, compute_dtype=compute_dtype)

    out3d = pl.pallas_call(
        kernel,
        out_shape=jax.ShapeDtypeStruct((N, NUM_CLASSES, HW_pad), jnp.float32),
        grid_spec=pltpu.PrefetchScalarGridSpec(
            num_scalar_prefetch=0,
            grid=(N, n_tiles),
            in_specs=[
                # x slab: (C, tile_m), batch dim squeezed.
                pl.BlockSpec((None, C, tile_m), lambda n, j: (n, 0, j)),
                # constant-index weights/biases stay resident across the grid.
                pl.BlockSpec((C, C), lambda n, j: (0, 0)),
                pl.BlockSpec((C, 1), lambda n, j: (0, 0)),
                pl.BlockSpec((NUM_CLASSES, C), lambda n, j: (0, 0)),
                pl.BlockSpec((NUM_CLASSES, 1), lambda n, j: (0, 0)),
            ],
            out_specs=pl.BlockSpec(
                (None, NUM_CLASSES, tile_m), lambda n, j: (n, 0, j)
            ),
        ),
        compiler_params=pltpu.CompilerParams(
            dimension_semantics=("parallel", "parallel"),
            vmem_limit_bytes=int(vmem_limit),
        ),
    )(x3d, w1, shift, w2, b2)

    # Slice off pixel padding (no-op when HW % 128 == 0), then a free reshape
    # back to NCHW.
    if HW_pad != HW:
        out3d = out3d[:, :, :HW]
    return out3d.reshape(N, NUM_CLASSES, H, W)


def init_params(key, c):
    """Deterministic synthetic parameters matching Head(c).__init__ shapes."""
    k1, k2, k3, k4, k5 = jax.random.split(key, 5)
    # linear_fuse.conv : Conv2d(c, c, 1, bias=False) -> weight (c_out, c_in)
    w_fuse = jax.random.normal(k1, (c, c), jnp.float32) * (1.0 / jnp.sqrt(c))
    # linear_fuse.bn : BatchNorm2d(c) (inference / running stats)
    gamma = 1.0 + 0.1 * jax.random.normal(k2, (c,), jnp.float32)
    beta = 0.1 * jax.random.normal(k3, (c,), jnp.float32)
    running_mean = 0.05 * jax.random.normal(k4, (c,), jnp.float32)
    running_var = jnp.ones((c,), jnp.float32)
    eps = 1e-5
    bn_scale = gamma / jnp.sqrt(running_var + eps)
    bn_shift = beta - running_mean * bn_scale
    # conv_seg : Conv2d(c, 2, 1) -> weight (2, c), bias (2,)
    w_seg = jax.random.normal(k5, (NUM_CLASSES, c), jnp.float32) * (
        1.0 / jnp.sqrt(c)
    )
    b_seg = jnp.array([0.01, -0.02], jnp.float32)
    return {
        "w_fuse": w_fuse,          # (C_out, C_in)
        "bn_scale": bn_scale,      # (C,)
        "bn_shift": bn_shift,      # (C,)
        "w_seg": w_seg,            # (2, C)
        "b_seg": b_seg,            # (2,)
    }


def head_reference(x_nchw, params):
    """Pure-JAX f32 reference of the same (eval-mode) forward."""
    N, C, H, W = x_nchw.shape
    x3 = x_nchw.reshape(N, C, H * W)
    h = jnp.einsum("oc,ncm->nom", params["w_fuse"], x3)
    h = h * params["bn_scale"][None, :, None] + params["bn_shift"][None, :, None]
    h = jnp.clip(h, 0.0, 6.0)
    y = jnp.einsum("oc,ncm->nom", params["w_seg"], h)
    y = y + params["b_seg"][None, :, None]
    return y.reshape(N, NUM_CLASSES, H, W)


if __name__ == "__main__":
    key = jax.random.PRNGKey(0)
    kx, kp = jax.random.split(key)

    N, C, H, W = 2, 256, 16, 16   # module default c=256
    x = jax.random.normal(kx, (N, C, H, W), jnp.float32)
    params = init_params(kp, C)

    ref = head_reference(x, params)

    # f32 path: tight numerical check against the pure-JAX reference.
    out_f32 = jax.block_until_ready(
        head_forward(x, params, compute_dtype=jnp.float32)
    )
    assert out_f32.shape == (N, NUM_CLASSES, H, W)
    assert jnp.allclose(out_f32, ref, atol=5e-4, rtol=5e-4)

    # bf16 fast path (bf16-fed MXU on both dots, f32 accumulation); loose check.
    out_bf16 = jax.block_until_ready(head_forward(x, params))
    assert out_bf16.shape == (N, NUM_CLASSES, H, W)
    assert jnp.allclose(out_bf16, ref, atol=5e-2, rtol=5e-2)

    print("KERNEL_OK")
</pallas_src>

<mosaic_0001>
module attributes {stable_mosaic.version = 11 : i64} {
  func.func @head_kernel(%arg0: i32, %arg1: i32, %arg2: memref<1x256x256xf32, #tpu.memory_space<vmem>>, %arg3: memref<256x256xf32, #tpu.memory_space<vmem>>, %arg4: memref<256x1xf32, #tpu.memory_space<vmem>>, %arg5: memref<2x256xf32, #tpu.memory_space<vmem>>, %arg6: memref<2x1xf32, #tpu.memory_space<vmem>>, %arg7: memref<1x2x256xf32, #tpu.memory_space<vmem>>) attributes {dimension_semantics = [#tpu.dimension_semantics<parallel>, #tpu.dimension_semantics<parallel>], iteration_bounds = array<i64: 2, 1>, scalar_prefetch = 0 : i64, scratch_operands = 0 : i64, tpu.core_type = #tpu.core_type<tc>, window_params = [{transform_indices = @transform_0, window_bounds = array<i64: 1, 256, 256>}, {pipeline_mode = #tpu.pipeline_mode<synchronous>, transform_indices = @transform_1, window_bounds = array<i64: 256, 256>}, {pipeline_mode = #tpu.pipeline_mode<synchronous>, transform_indices = @transform_2, window_bounds = array<i64: 256, 1>}, {pipeline_mode = #tpu.pipeline_mode<synchronous>, transform_indices = @transform_3, window_bounds = array<i64: 2, 256>}, {pipeline_mode = #tpu.pipeline_mode<synchronous>, transform_indices = @transform_4, window_bounds = array<i64: 2, 1>}, {transform_indices = @transform_5, window_bounds = array<i64: 1, 2, 256>}]} {
    %c0 = arith.constant 0 : index
    %c0_0 = arith.constant 0 : index
    %c0_1 = arith.constant 0 : index
    %0 = vector.load %arg2[%c0, %c0_0, %c0_1] : memref<1x256x256xf32, #tpu.memory_space<vmem>>, vector<1x256x256xf32>
    %1 = vector.shape_cast %0 : vector<1x256x256xf32> to vector<256x256xf32>
    %c0_2 = arith.constant 0 : index
    %c0_3 = arith.constant 0 : index
    %2 = vector.load %arg3[%c0_2, %c0_3] : memref<256x256xf32, #tpu.memory_space<vmem>>, vector<256x256xf32>
    %cst = arith.constant dense<0.000000e+00> : vector<256x256xf32>
    %3 = tpu.matmul %2, %1, %cst {dimension_numbers = #tpu.dot_dimension_numbers<[1], [0], [0], [1], [0, 0, 1, 1], [], []>} : vector<256x256xf32>, vector<256x256xf32>, vector<256x256xf32> -> vector<256x256xf32>
    %c0_4 = arith.constant 0 : index
    %c0_5 = arith.constant 0 : index
    %4 = vector.load %arg4[%c0_4, %c0_5] : memref<256x1xf32, #tpu.memory_space<vmem>>, vector<256x1xf32>
    %5 = vector.broadcast %4 : vector<256x1xf32> to vector<256x256xf32>
    %6 = arith.addf %3, %5 : vector<256x256xf32>
    %cst_6 = arith.constant 0.000000e+00 : f32
    %cst_7 = arith.constant 6.000000e+00 : f32
    %7 = vector.broadcast %cst_6 : f32 to vector<256x256xf32>
    %8 = arith.maximumf %7, %6 : vector<256x256xf32>
    %9 = vector.broadcast %cst_7 : f32 to vector<256x256xf32>
    %10 = arith.minimumf %9, %8 : vector<256x256xf32>
    %c0_8 = arith.constant 0 : index
    %c0_9 = arith.constant 0 : index
    %11 = vector.load %arg5[%c0_8, %c0_9] : memref<2x256xf32, #tpu.memory_space<vmem>>, vector<2x256xf32>
    %cst_10 = arith.constant dense<0.000000e+00> : vector<2x256xf32>
    %12 = tpu.matmul %11, %10, %cst_10 {dimension_numbers = #tpu.dot_dimension_numbers<[1], [0], [0], [1], [0, 0, 1, 1], [], []>} : vector<2x256xf32>, vector<256x256xf32>, vector<2x256xf32> -> vector<2x256xf32>
    %c0_11 = arith.constant 0 : index
    %c0_12 = arith.constant 0 : index
    %13 = vector.load %arg6[%c0_11, %c0_12] : memref<2x1xf32, #tpu.memory_space<vmem>>, vector<2x1xf32>
    %14 = vector.broadcast %13 : vector<2x1xf32> to vector<2x256xf32>
    %15 = arith.addf %12, %14 : vector<2x256xf32>
    %c0_13 = arith.constant 0 : index
    %c0_14 = arith.constant 0 : index
    %c0_15 = arith.constant 0 : index
    %16 = vector.load %arg7[%c0_13, %c0_14, %c0_15] : memref<1x2x256xf32, #tpu.memory_space<vmem>>, vector<1x2x256xf32>
    %17 = vector.shape_cast %16 : vector<1x2x256xf32> to vector<2x256xf32>
    %18 = vector.shape_cast %15 : vector<2x256xf32> to vector<1x2x256xf32>
    tpu.vector_store %arg7[%c0_13, %c0_14, %c0_15], %18 {strides = array<i32>} : memref<1x2x256xf32, #tpu.memory_space<vmem>>, vector<1x2x256xf32>,
    return
  }
  func.func @transform_0(%arg0: i32, %arg1: i32) -> (i32, i32, i32) {
    %c0_i32 = arith.constant 0 : i32
    %c0_i32_0 = arith.constant 0 : i32
    return %arg0, %c0_i32, %arg1 : i32, i32, i32
  }
  func.func @transform_1(%arg0: i32, %arg1: i32) -> (i32, i32) {
    %c0_i32 = arith.constant 0 : i32
    %c0_i32_0 = arith.constant 0 : i32
    %c0_i32_1 = arith.constant 0 : i32
    return %c0_i32, %c0_i32_0 : i32, i32
  }
  func.func @transform_2(%arg0: i32, %arg1: i32) -> (i32, i32) {
    %c0_i32 = arith.constant 0 : i32
    %c0_i32_0 = arith.constant 0 : i32
    %c0_i32_1 = arith.constant 0 : i32
    return %c0_i32, %c0_i32_0 : i32, i32
  }
  func.func @transform_3(%arg0: i32, %arg1: i32) -> (i32, i32) {
    %c0_i32 = arith.constant 0 : i32
    %c0_i32_0 = arith.constant 0 : i32
    %c0_i32_1 = arith.constant 0 : i32
    return %c0_i32, %c0_i32_0 : i32, i32
  }
  func.func @transform_4(%arg0: i32, %arg1: i32) -> (i32, i32) {
    %c0_i32 = arith.constant 0 : i32
    %c0_i32_0 = arith.constant 0 : i32
    %c0_i32_1 = arith.constant 0 : i32
    return %c0_i32, %c0_i32_0 : i32, i32
  }
  func.func @transform_5(%arg0: i32, %arg1: i32) -> (i32, i32, i32) {
    %c0_i32 = arith.constant 0 : i32
    %c0_i32_0 = arith.constant 0 : i32
    return %arg0, %c0_i32, %arg1 : i32, i32, i32
  }
}

</mosaic_0001>

<bundles_post_ra>
// kernel: tpu_custom_call.1
= control target key start
LH: loop header
LB: loop body
LE: loop exit
PB: predicated region body
PF: predicated region fallthrough
CT: control target
= control target key end

     0   :  { %s2284_s0 = inlined_call_operand.hbm [shape: f32[2,256,256], index: 0, kind: input, shape index: {}]   ;;  %s2285_s1 = inlined_call_operand.hbm [shape: f32[256,256], index: 1, kind: input, shape index: {}]   ;;  %s2286_s2 = inlined_call_operand.vmem [shape: f32[256,1], index: 2, kind: input, shape index: {}]   ;;  %s2287_s3 = inlined_call_operand.vmem [shape: f32[2,256], index: 3, kind: input, shape index: {}]   ;;  %s2288_s4 = inlined_call_operand.vmem [shape: f32[2,1], index: 4, kind: input, shape index: {}]   ;;  %s2289_s5 = inlined_call_operand.hbm [shape: f32[2,2,256], index: 5, kind: output, shape index: {}]  }
   0x1   :  { %2309 = sst [smem:[#allocation39_spill]] %s2285_s1 }
   0x2   :  { %10 = vsyncpa [#allocation3], 0 }
   0x3   :  { %12 = vsyncpa [#allocation3 + $0x1], 0 }
   0x4   :  { %13 = vsyncpa [#allocation6], 0 }
   0x5   :  { %14 = vsyncpa [#allocation4], 0 }
   0x6   :  { %16 = vsyncpa [#allocation4 + $0x1], 0  ;;  %s1675_s18 = smov 0   ;;  %s1677_s19 = smov 0  }
   0x7   :  { %s1679_s20 = smov 0   ;;  %s1681_s21 = smov 0  }
   0x8   :  { %s1683_s22 = smov 0   ;;  %s1685_s23 = smov 0  }
   0x9 LB: > { %2310 = sst [smem:[#allocation11_spill]] %s1639_s23  ;;  %s1395_s24 = sadd.s32 4294967295, %s1639_s23   ;;  %s1639_s23 = sphi %s1685_s23, %s22_s23   ;;  %s1635_s22 = sphi %s1683_s22, %s2380_s22   ;;  %s1631_s21 = sphi %s1681_s21, %s2379_s21   ;;  %s1627_s20 = sphi %s1679_s20, %s2378_s20   ;;  %s1623_s19 = sphi %s1677_s19, %s2377_s19   ;;  %s1619_s18 = sphi %s1675_s18, %s2376_s18  }
   0xa   : > { %s1396_s25 = sadd.s32 4294967294, %s1639_s23   ;;  %p56_p0 = scmp.ne.s32.totalorder %s1623_s19, %s1619_s18 }
   0xb   : > { %p1709_p1 = scmp.eq.s32.totalorder %s1395_s24, 0  ;;  %p1713_p2 = scmp.eq.s32.totalorder %s1395_s24, 1 }
   0xc   : > { %p172_p3 = scmp.eq.s32.totalorder %s1396_s25, 1  ;;  %p1397_p5 = scmp.ge.s32.totalorder %s1639_s23, 1 }
   0xd   : > { %p1719_p4 = por %p1709_p1, %p56_p0  ;;  %p179_p7 = scmp.lt.s32.totalorder %s1639_s23, 3 }
   0xe   : > { %p1724_p6 = por %p172_p3, %p56_p0  ;;  %s2315_s1 = sld [smem:[#allocation39_spill]] }
   0xf   : > { %p1732_p8 = pnand %p1397_p5, %p179_p7  ;;  %s1641_s9 = smov [#allocation5]  }
  0x10   : > { %s192_s10 = sshll.u32 %s1641_s9, 4  ;;  %p1399_p11 = scmp.ge.s32.totalorder %s1639_s23, 2  ;;  %s193_s10 = int_to_ptr.vmem [resolvable:$true] %s192_s10 }
  0x11   : > { %p1422_p9 = pneg %p1732_p8  ;;  %s2290_s11 = smov 256  }
  0x12   : > { %s2291_s12 = smov 16   ;;  %s34_s13 = sadd.s32 1, %s1635_s22 }
  0x13   : > { %p1423_p10 = pnand %p1422_p9, %p1709_p1  ;;  %p36_p12 = scmp.ge.s32.totalorder %s34_s13, 2 }
  0x14   : > { %s190_s7 = sshll.u32 %s2315_s1, 4  ;;  %s43_s14 = sadd.s32 1, %s1627_s20  ;;  %s191_s7 = int_to_ptr.hbm [resolvable:$true] %s190_s7 }
  0x15   : > { %1425 = dma.hbm_to_vmem [thread:$0]  (!%p1423_p10), %s191_s7, 8192, %s193_s10, [#allocation6], %s2290_s11, %s2290_s11, %s2291_s12  }
  0x16   : > { %p50_p13 = scmp.ne.s32.totalorder %s1627_s20, %s1623_s19  ;;  %p51_p0 = scmp.eq.s32.totalorder %s1639_s23, 0 }
  0x17   : > { %s2382_s13 = smov (%p36_p12, %s34_s13), 0  ;;  %p1435_p7 = scmp.lt.s32.totalorder %s1639_s23, 2 }
  0x18   : > { %2317 = sst [smem:[#allocation12_spill]] %s2382_s13  ;;  %p1751_p3 = por %p51_p0, %p50_p13 }
  0x19   : > { %p1757_p5 = por %p1713_p2, %p50_p13  ;;  %s38_s17 = ssub.s32 %s1635_s22, %s2382_s13 }
  0x1a   : > { %p41_p9 = scmp.eq.s32.totalorder %s38_s17, 0  ;;  %s215_s24 = sand.u32 1, %s1627_s20  }
  0x1b   : > { %s1400_s25 = sshll.u32 %s215_s24, 9  ;;  %s1412_s6 = sshll.u32 %s1635_s22, 9 }
  0x1c   : > { %s1766_s30 = scalar_select %p41_p9, %s1627_s20, %s43_s14  }
  0x1d   : > { %s226_s10 = scalar_lea.hbm %s2284_s0, %s1412_s6  ;;  %s219_s11 = scalar_lea.vmem [#allocation2], %s1400_s25 }
  0x1e   : > { %s229_s12 = sshll.u32 %s219_s11, 4  ;;  %s227_s27 = sshll.u32 %s226_s10, 4  ;;  %s230_s12 = int_to_ptr.vmem [resolvable:$true] %s229_s12  ;;  %s228_s27 = int_to_ptr.hbm [resolvable:$true] %s227_s27 }
  0x1f   : > { %p1427_p2 = pnand %p1435_p7, %p1751_p3  ;;  %s216_s1 = scalar_lea.sflag [#allocation3], %s215_s24 }
  0x20   : > { %s2320_s13 = smov 16   ;;  %s2321_s23 = smov 256  }
  0x21   : > { %1429 = dma.hbm_to_vmem [thread:$0]  (!%p1427_p2), %s228_s27, 8192, %s230_s12, %s216_s1, %s2321_s23, %s2321_s23, %s2320_s13  }
  0x22   : > { %241 = sbr.rel (%p1732_p8) target bundleno = 645 (0x285), region = 40 }
  0x27   : > { %s1780_s14 = sand.u32 1, %s1623_s19  }
  0x28   : > { %s1404_s11 = sshll.u32 %s1780_s14, 9  ;;  %s244_s17 = scalar_lea.sflag [#allocation3], %s1780_s14 }
  0x29   : > { %s1784_s25 = scalar_lea.vmem [#allocation2], %s1404_s11 }
  0x2a   : > { %1606 = dma.done.wait (%p1719_p4), %s244_s17, 8192  }
  0x2b   : > { %1608 = vsyncadd (%p1719_p4), %s244_s17, 4294959104 }
  0x2c   : > { %1610 = dma.done.wait (%p1709_p1), [#allocation6], 8192  }
  0x2d   : > { %1612 = vsyncadd (%p1709_p1), [#allocation6], 4294959104  ;;  %v1644_v0 = vmov 0   ;;  %v441_v1 = vld [vmem:[%s2286_s2 + $0xf8] sm:$0xff]  ;;  %v440_v2 = vld [vmem:[%s2286_s2 + $0xf0] sm:$0xff]  ;;  %s1406_s28 = sshll.u32 %s1780_s14, 2 }
  0x2e   : > { %1492 = vset.pattern.permute.xlu2 %v1644_v0  ;;  %1491 = vset.pattern.permute.xlu1 %v1644_v0  ;;  %v425_v3 = vld [vmem:[%s2286_s2 + $0x78] sm:$0xff]  ;;  %v313_v5 = vld [vmem:[%s1784_s25 + $0xf8] sm:$0xff]  ;;  %v310_v6 = vld [vmem:[%s1784_s25 + $0xe0] sm:$0xff]  ;;  %s1413_s8 = sshll.u32 %s1631_s21, 2  ;;  %s279_s13 = scalar_lea.vmem [#allocation7], %s1406_s28  ;;  %vm1278_vm0 = vcmask 1041408  }
  0x2f   : > { %1490 = vset.pattern.permute.xlu0 %v1644_v0  ;;  %599 = vperm.xlu1 %1491, %v441_v1   ;;  %v312_v4 = vld [vmem:[%s1784_s25 + $0xf0] sm:$0xff]  ;;  %v311_v8 = vld [vmem:[%s1784_s25 + $0xe8] sm:$0xff]  ;;  %v345_v9 = vld [vmem:[%s1784_s25 + $0x1f8] sm:$0xff]  ;;  %s1296_s12 = scalar_lea.hbm %s2289_s5, %s1413_s8  ;;  %s1298_s15 = sshll.u32 %s279_s13, 4  ;;  %s1299_s15 = int_to_ptr.vmem [resolvable:$true] %s1298_s15 }
  0x30   : > { %594 = vperm.xlu2 %1492, %v440_v2   ;;  %519 = vperm.xlu0 %1490, %v425_v3   ;;  %v344_v7 = vld [vmem:[%s1784_s25 + $0x1f0] sm:$0xff]  ;;  %v342_v11 = vld [vmem:[%s1784_s25 + $0x1e0] sm:$0xff]  ;;  %v309_v12 = vld [vmem:[%s1784_s25 + $0xd8] sm:$0xff]  ;;  %s1300_s24 = sshll.u32 %s1296_s12, 4  ;;  %s1283_s21 = scalar_lea.sflag [#allocation4], %s1780_s14  ;;  %s1301_s24 = int_to_ptr.hbm [resolvable:$true] %s1300_s24 }
  0x31   : > { %602 = vmatpush.msra.mxu0 %v312_v4  ;;  %828 = vmatpush.msra.mxu2 %v313_v5  ;;  %v308_v10 = vld [vmem:[%s1784_s25 + $0xd0] sm:$0xff]  ;;  %v343_v13 = vld [vmem:[%s1784_s25 + $0x1e8] sm:$0xff]  ;;  %v306_v15 = vld [vmem:[%s1784_s25 + $0xc0] sm:$0xff]  ;;  %s1567_s6 = sshra.s32 %s1301_s24, 4  ;;  %s1573_s27 = scalar_lea.hbm %s2289_s5, 8  ;;  %s1568_s6 = int_to_ptr.hbm [resolvable:$true] %s1567_s6 }
  0x32   : > { %715 = vmatpush.msra.mxu1 %v344_v7  ;;  %941 = vmatpush.msra.mxu3 %v345_v9  ;;  %v340_v14 = vld [vmem:[%s1784_s25 + $0x1d0] sm:$0xff]  ;;  %v341_v16 = vld [vmem:[%s1784_s25 + $0x1d8] sm:$0xff]  ;;  %v307_v17 = vld [vmem:[%s1784_s25 + $0xc8] sm:$0xff]  ;;  %s1569_s7 = scalar_lea.hbm %s1568_s6, 4  ;;  %p1574_p10 = scmp.lt.s32.totalorder %s1568_s6, %s2289_s5 }
  0x33   : > { %603 = vmatpush.msra.mxu0 %v310_v6  ;;  %829 = vmatpush.msra.mxu2 %v311_v8  ;;  %v423_v18 = vld [vmem:[%s2286_s2 + $0x68] sm:$0xff]  ;;  %v424_v19 = vld [vmem:[%s2286_s2 + $0x70] sm:$0xff]  ;;  %v422_v20 = vld [vmem:[%s2286_s2 + $0x60] sm:$0xff]  ;;  %p1570_p1 = scmp.ne.s32.totalorder %s1568_s6, %s1569_s7  ;;  %p1575_p12 = scmp.lt.s32.totalorder %s1573_s27, %s1569_s7 }
  0x34   : > { %716 = vmatpush.msra.mxu1 %v342_v11  ;;  %942 = vmatpush.msra.mxu3 %v343_v13  ;;  %v304_v21 = vld [vmem:[%s1784_s25 + $0xb0] sm:$0xff]  ;;  %v338_v22 = vld [vmem:[%s1784_s25 + $0x1c0] sm:$0xff]  ;;  %v305_v23 = vld [vmem:[%s1784_s25 + $0xb8] sm:$0xff] }
  0x35   : > { %604 = vmatpush.msra.mxu0 %v308_v10  ;;  %830 = vmatpush.msra.mxu2 %v309_v12  ;;  %v339_v24 = vld [vmem:[%s1784_s25 + $0x1c8] sm:$0xff]  ;;  %v302_v25 = vld [vmem:[%s1784_s25 + $0xa0] sm:$0xff]  ;;  %v336_v26 = vld [vmem:[%s1784_s25 + $0x1b0] sm:$0xff]  ;;  %p1571_p4 = pnand %p1570_p1, %p1757_p5  ;;  %p1576_p13 = por %p1575_p12, %p1574_p10 }
  0x36   : > { %717 = vmatpush.msra.mxu1 %v340_v14  ;;  %943 = vmatpush.msra.mxu3 %v341_v16  ;;  %v303_v27 = vld [vmem:[%s1784_s25 + $0xa8] sm:$0xff]  ;;  %v337_v28 = vld [vmem:[%s1784_s25 + $0x1b8] sm:$0xff]  ;;  %v300_v29 = vld [vmem:[%s1784_s25 + $0x90] sm:$0xff] }
  0x37   : > { %605 = vmatpush.msra.mxu0 %v306_v15  ;;  %831 = vmatpush.msra.mxu2 %v307_v17  ;;  %v334_v30 = vld [vmem:[%s1784_s25 + $0x1a0] sm:$0xff]  ;;  %v301_v31 = vld [vmem:[%s1784_s25 + $0x98] sm:$0xff]  ;;  %v335_v32 = vld [vmem:[%s1784_s25 + $0x1a8] sm:$0xff]  ;;  %p1572_p8 = pneg %p1571_p4 }
  0x38   : > { %509 = vperm.xlu1 %1491, %v423_v18   ;;  %514 = vperm.xlu0 %1490, %v424_v19   ;;  %v298_v33 = vld [vmem:[%s1784_s25 + $0x80] sm:$0xff]  ;;  %v332_v34 = vld [vmem:[%s1784_s25 + $0x190] sm:$0xff]  ;;  %v299_v35 = vld [vmem:[%s1784_s25 + $0x88] sm:$0xff] }
  0x39   : > { %504 = vperm.xlu2 %1492, %v422_v20   ;;  %606 = vmatpush.msra.mxu0 %v304_v21  ;;  %v333_v36 = vld [vmem:[%s1784_s25 + $0x198] sm:$0xff]  ;;  %v439_v37 = vld [vmem:[%s2286_s2 + $0xe8] sm:$0xff]  ;;  %v421_v39 = vld [vmem:[%s2286_s2 + $0x58] sm:$0xff]  ;;  %p1577_p0 = pnand %p1576_p13, %p1572_p8 }
  0x3a   : > { %718 = vmatpush.msra.mxu1 %v338_v22  ;;  %832 = vmatpush.msra.mxu2 %v305_v23  ;;  %v438_v38 = vld [vmem:[%s2286_s2 + $0xe0] sm:$0xff]  ;;  %v296_v40 = vld [vmem:[%s1784_s25 + $0x70] sm:$0xff]  ;;  %v330_v41 = vld [vmem:[%s1784_s25 + $0x180] sm:$0xff] }
  0x3b   : > { %944 = vmatpush.msra.mxu3 %v339_v24  ;;  %607 = vmatpush.msra.mxu0 %v302_v25  ;;  %v297_v42 = vld [vmem:[%s1784_s25 + $0x78] sm:$0xff]  ;;  %v331_v43 = vld [vmem:[%s1784_s25 + $0x188] sm:$0xff]  ;;  %v294_v44 = vld [vmem:[%s1784_s25 + $0x60] sm:$0xff] }
  0x3c   : > { %719 = vmatpush.msra.mxu1 %v336_v26  ;;  %833 = vmatpush.msra.mxu2 %v303_v27  ;;  %v328_v45 = vld [vmem:[%s1784_s25 + $0x170] sm:$0xff]  ;;  %v295_v46 = vld [vmem:[%s1784_s25 + $0x68] sm:$0xff]  ;;  %v329_v47 = vld [vmem:[%s1784_s25 + $0x178] sm:$0xff] }
  0x3d   : > { %945 = vmatpush.msra.mxu3 %v337_v28  ;;  %608 = vmatpush.msra.mxu0 %v300_v29  ;;  %v292_v48 = vld [vmem:[%s1784_s25 + $0x50] sm:$0xff]  ;;  %v326_v49 = vld [vmem:[%s1784_s25 + $0x160] sm:$0xff]  ;;  %v293_v50 = vld [vmem:[%s1784_s25 + $0x58] sm:$0xff] }
  0x3e   : > { %720 = vmatpush.msra.mxu1 %v334_v30  ;;  %834 = vmatpush.msra.mxu2 %v301_v31  ;;  %v327_v51 = vld [vmem:[%s1784_s25 + $0x168] sm:$0xff]  ;;  %v290_v52 = vld [vmem:[%s1784_s25 + $0x40] sm:$0xff]  ;;  %v324_v53 = vld [vmem:[%s1784_s25 + $0x150] sm:$0xff] }
  0x3f   : > { %946 = vmatpush.msra.mxu3 %v335_v32  ;;  %609 = vmatpush.msra.mxu0 %v298_v33  ;;  %v291_v54 = vld [vmem:[%s1784_s25 + $0x48] sm:$0xff]  ;;  %v325_v55 = vld [vmem:[%s1784_s25 + $0x158] sm:$0xff]  ;;  %v437_v56 = vld [vmem:[%s2286_s2 + $0xd8] sm:$0xff] }
  0x40   : > { %721 = vmatpush.msra.mxu1 %v332_v34  ;;  %835 = vmatpush.msra.mxu2 %v299_v35  ;;  %v420_v57 = vld [vmem:[%s2286_s2 + $0x50] sm:$0xff]  ;;  %v419_v58 = vld [vmem:[%s2286_s2 + $0x48] sm:$0xff]  ;;  %v288_v59 = vld [vmem:[%s1784_s25 + $0x30] sm:$0xff] }
  0x41   : > { %947 = vmatpush.msra.mxu3 %v333_v36  ;;  %589 = vperm.xlu0 %1490, %v439_v37   ;;  %v322_v60 = vld [vmem:[%s1784_s25 + $0x140] sm:$0xff]  ;;  %v289_v61 = vld [vmem:[%s1784_s25 + $0x38] sm:$0xff]  ;;  %v323_v62 = vld [vmem:[%s1784_s25 + $0x148] sm:$0xff] }
  0x42   : > { %584 = vperm.xlu2 %1492, %v438_v38   ;;  %499 = vperm.xlu1 %1491, %v421_v39   ;;  %v286_v63 = vld [vmem:[%s1784_s25 + $0x20] sm:$0xff]  ;;  %v320_v0 = vld [vmem:[%s1784_s25 + $0x130] sm:$0xff]  ;;  %v287_v1 = vld [vmem:[%s1784_s25 + $0x28] sm:$0xff] }
  0x43   : > { %610 = vmatpush.msra.mxu0 %v296_v40  ;;  %722 = vmatpush.msra.mxu1 %v330_v41  ;;  %v321_v2 = vld [vmem:[%s1784_s25 + $0x138] sm:$0xff]  ;;  %v284_v3 = vld [vmem:[%s1784_s25 + $0x10] sm:$0xff]  ;;  %v318_v4 = vld [vmem:[%s1784_s25 + $0x120] sm:$0xff] }
  0x44   : > { %836 = vmatpush.msra.mxu2 %v297_v42  ;;  %948 = vmatpush.msra.mxu3 %v331_v43  ;;  %v285_v5 = vld [vmem:[%s1784_s25 + $0x18] sm:$0xff]  ;;  %v319_v6 = vld [vmem:[%s1784_s25 + $0x128] sm:$0xff]  ;;  %v282_v7 = vld [vmem:[%s1784_s25] sm:$0xff] }
  0x45   : > { %611 = vmatpush.msra.mxu0 %v294_v44  ;;  %723 = vmatpush.msra.mxu1 %v328_v45  ;;  %v316_v8 = vld [vmem:[%s1784_s25 + $0x110] sm:$0xff]  ;;  %v283_v9 = vld [vmem:[%s1784_s25 + $0x8] sm:$0xff]  ;;  %v317_v10 = vld [vmem:[%s1784_s25 + $0x118] sm:$0xff] }
  0x46   : > { %837 = vmatpush.msra.mxu2 %v295_v46  ;;  %949 = vmatpush.msra.mxu3 %v329_v47  ;;  %v346_v11 = vld [vmem:[#allocation5] sm:$0xff]  ;;  %v436_v12 = vld [vmem:[%s2286_s2 + $0xd0] sm:$0xff]  ;;  %v418_v14 = vld [vmem:[%s2286_s2 + $0x40] sm:$0xff] }
  0x47   : > { %612 = vmatpush.msra.mxu0 %v292_v48  ;;  %724 = vmatpush.msra.mxu1 %v326_v49  ;;  %v435_v13 = vld [vmem:[%s2286_s2 + $0xc8] sm:$0xff]  ;;  %v315_v16 = vld [vmem:[%s1784_s25 + $0x108] sm:$0xff]  ;;  %v348_v18 = vld [vmem:[#allocation5 + $0x10] sm:$0xff] }
  0x48   : > { %838 = vmatpush.msra.mxu2 %v293_v50  ;;  %950 = vmatpush.msra.mxu3 %v327_v51  ;;  %v314_v15 = vld [vmem:[%s1784_s25 + $0x100] sm:$0xff]  ;;  %v347_v17 = vld [vmem:[#allocation5 + $0x8] sm:$0xff]  ;;  %v417_v19 = vld [vmem:[%s2286_s2 + $0x38] sm:$0xff] }
  0x49   : > { %613 = vmatpush.msra.mxu0 %v290_v52  ;;  %725 = vmatpush.msra.mxu1 %v324_v53  ;;  %v416_v20 = vld [vmem:[%s2286_s2 + $0x30] sm:$0xff]  ;;  %v434_v21 = vld [vmem:[%s2286_s2 + $0xc0] sm:$0xff]  ;;  %v350_v23 = vld [vmem:[#allocation5 + $0x20] sm:$0xff] }
  0x4a   : > { %839 = vmatpush.msra.mxu2 %v291_v54  ;;  %951 = vmatpush.msra.mxu3 %v325_v55  ;;  %v349_v22 = vld [vmem:[#allocation5 + $0x18] sm:$0xff]  ;;  %v433_v24 = vld [vmem:[%s2286_s2 + $0xb8] sm:$0xff]  ;;  %v432_v25 = vld [vmem:[%s2286_s2 + $0xb0] sm:$0xff] }
  0x4b   : > { %579 = vperm.xlu1 %1491, %v437_v56   ;;  %494 = vperm.xlu0 %1490, %v420_v57   ;;  %v415_v26 = vld [vmem:[%s2286_s2 + $0x28] sm:$0xff]  ;;  %v351_v27 = vld [vmem:[#allocation5 + $0x28] sm:$0xff]  ;;  %v352_v28 = vld [vmem:[#allocation5 + $0x30] sm:$0xff] }
  0x4c   : > { %489 = vperm.xlu2 %1492, %v419_v58   ;;  %614 = vmatpush.msra.mxu0 %v288_v59  ;;  %v414_v29 = vld [vmem:[%s2286_s2 + $0x20] sm:$0xff]  ;;  %v413_v30 = vld [vmem:[%s2286_s2 + $0x18] sm:$0xff]  ;;  %v431_v31 = vld [vmem:[%s2286_s2 + $0xa8] sm:$0xff] }
  0x4d   : > { %726 = vmatpush.msra.mxu1 %v322_v60  ;;  %840 = vmatpush.msra.mxu2 %v289_v61  ;;  %v353_v32 = vld [vmem:[#allocation5 + $0x38] sm:$0xff]  ;;  %v354_v33 = vld [vmem:[#allocation5 + $0x40] sm:$0xff]  ;;  %v429_v35 = vld [vmem:[%s2286_s2 + $0x98] sm:$0xff] }
  0x4e   : > { %952 = vmatpush.msra.mxu3 %v323_v62  ;;  %615 = vmatpush.msra.mxu0 %v286_v63  ;;  %v430_v34 = vld [vmem:[%s2286_s2 + $0xa0] sm:$0xff]  ;;  %v412_v36 = vld [vmem:[%s2286_s2 + $0x10] sm:$0xff]  ;;  %v356_v38 = vld [vmem:[#allocation5 + $0x50] sm:$0xff] }
  0x4f   : > { %727 = vmatpush.msra.mxu1 %v320_v0  ;;  %841 = vmatpush.msra.mxu2 %v287_v1  ;;  %v355_v37 = vld [vmem:[#allocation5 + $0x48] sm:$0xff]  ;;  %v411_v39 = vld [vmem:[%s2286_s2 + $0x8] sm:$0xff]  ;;  %v410_v40 = vld [vmem:[%s2286_s2] sm:$0xff] }
  0x50   : > { %953 = vmatpush.msra.mxu3 %v321_v2  ;;  %616 = vmatpush.msra.mxu0 %v284_v3  ;;  %v357_v41 = vld [vmem:[#allocation5 + $0x58] sm:$0xff]  ;;  %v358_v42 = vld [vmem:[#allocation5 + $0x60] sm:$0xff]  ;;  %v359_v43 = vld [vmem:[#allocation5 + $0x68] sm:$0xff] }
  0x51   : > { %728 = vmatpush.msra.mxu1 %v318_v4  ;;  %842 = vmatpush.msra.mxu2 %v285_v5  ;;  %v360_v44 = vld [vmem:[#allocation5 + $0x70] sm:$0xff]  ;;  %v361_v46 = vld [vmem:[#allocation5 + $0x78] sm:$0xff]  ;;  %v362_v47 = vld [vmem:[#allocation5 + $0x80] sm:$0xff] }
  0x52   : > { %954 = vmatpush.msra.mxu3 %v319_v6  ;;  %617 = vmatpush.msra.mxu0 %v282_v7  ;;  %v363_v49 = vld [vmem:[#allocation5 + $0x88] sm:$0xff]  ;;  %v364_v50 = vld [vmem:[#allocation5 + $0x90] sm:$0xff]  ;;  %v365_v52 = vld [vmem:[#allocation5 + $0x98] sm:$0xff] }
  0x53   : > { %729 = vmatpush.msra.mxu1 %v316_v8  ;;  %843 = vmatpush.msra.mxu2 %v283_v9  ;;  %v366_v53 = vld [vmem:[#allocation5 + $0xa0] sm:$0xff]  ;;  %v367_v56 = vld [vmem:[#allocation5 + $0xa8] sm:$0xff]  ;;  %v368_v58 = vld [vmem:[#allocation5 + $0xb0] sm:$0xff] }
  0x54   : > { %955 = vmatpush.msra.mxu3 %v317_v10  ;;  %618 = vmatmul.f32.vlgmr.msra.gmra.mxu0 %v346_v11  ;;  %v369_v61 = vld [vmem:[#allocation5 + $0xb8] sm:$0xff]  ;;  %v370_v63 = vld [vmem:[#allocation5 + $0xc0] sm:$0xff]  ;;  %v371_v1 = vld [vmem:[#allocation5 + $0xc8] sm:$0xff] }
  0x55   : > { %844 = vmatmul.f32.vlgmr.msra.gmra.mxu2 %v346_v11  ;;  %574 = vperm.xlu0 %1490, %v436_v12   ;;  %v372_v4 = vld [vmem:[#allocation5 + $0xd0] sm:$0xff]  ;;  %v373_v5 = vld [vmem:[#allocation5 + $0xd8] sm:$0xff]  ;;  %v428_v6 = vld [vmem:[%s2286_s2 + $0x90] sm:$0xff] }
  0x56   : > { %569 = vperm.xlu2 %1492, %v435_v13   ;;  %484 = vperm.xlu1 %1491, %v418_v14   ;;  %v374_v10 = vld [vmem:[#allocation5 + $0xe0] sm:$0xff]  ;;  %v375_v11 = vld [vmem:[#allocation5 + $0xe8] sm:$0xff]  ;;  %v426_v12 = vld [vmem:[%s2286_s2 + $0x80] sm:$0xff] }
  0x57   : > { %730 = vmatpush.msra.mxu1 %v314_v15  ;;  %956 = vmatpush.msra.mxu3 %v315_v16  ;;  %v376_v16 = vld [vmem:[#allocation5 + $0xf0] sm:$0xff] }
  0x58   : > { %731 = vmatmul.f32.vlgmr.msra.gmra.mxu1 %v347_v17  ;;  %957 = vmatmul.f32.vlgmr.msra.gmra.mxu3 %v347_v17  ;;  %v377_v17 = vld [vmem:[#allocation5 + $0xf8] sm:$0xff] }
  0x5c   : > { %621 = vmatmul.f32.gmra.mxu0 %v348_v18 }
  0x5d   : > { %847 = vmatmul.f32.gmra.mxu2 %v348_v18  ;;  %479 = vperm.xlu0 %1490, %v417_v19   ;;  %v427_v18 = vld [vmem:[%s2286_s2 + $0x88] sm:$0xff] }
  0x5e   : > { %474 = vperm.xlu2 %1492, %v416_v20   ;;  %564 = vperm.xlu1 %1491, %v434_v21  }
  0x60   : > { %734 = vmatmul.f32.gmra.mxu1 %v349_v22  ;;  %960 = vmatmul.f32.gmra.mxu3 %v349_v22 }
  0x64   : > { %624 = vmatmul.f32.gmra.mxu0 %v350_v23 }
  0x65   : > { %850 = vmatmul.f32.gmra.mxu2 %v350_v23  ;;  %559 = vperm.xlu0 %1490, %v433_v24   ;;  %v378_v23 = vld [vmem:[#allocation5 + $0x100] sm:$0xff] }
  0x66   : > { %554 = vperm.xlu2 %1492, %v432_v25   ;;  %469 = vperm.xlu1 %1491, %v415_v26   ;;  %v379_v25 = vld [vmem:[#allocation5 + $0x108] sm:$0xff] }
  0x68   : > { %737 = vmatmul.f32.gmra.mxu1 %v351_v27  ;;  %963 = vmatmul.f32.gmra.mxu3 %v351_v27 }
  0x6c   : > { %627 = vmatmul.f32.gmra.mxu0 %v352_v28 }
  0x6d   : > { %853 = vmatmul.f32.gmra.mxu2 %v352_v28  ;;  %464 = vperm.xlu0 %1490, %v414_v29  }
  0x6e   : > { %459 = vperm.xlu2 %1492, %v413_v30   ;;  %549 = vperm.xlu1 %1491, %v431_v31  }
  0x70   : > { %740 = vmatmul.f32.gmra.mxu1 %v353_v32  ;;  %966 = vmatmul.f32.gmra.mxu3 %v353_v32 }
  0x74   : > { %630 = vmatmul.f32.gmra.mxu0 %v354_v33 }
  0x75   : > { %856 = vmatmul.f32.gmra.mxu2 %v354_v33  ;;  %544 = vperm.xlu0 %1490, %v430_v34   ;;  %v380_v33 = vld [vmem:[#allocation5 + $0x110] sm:$0xff] }
  0x76   : > { %539 = vperm.xlu2 %1492, %v429_v35   ;;  %454 = vperm.xlu1 %1491, %v412_v36  }
  0x78   : > { %743 = vmatmul.f32.gmra.mxu1 %v355_v37  ;;  %969 = vmatmul.f32.gmra.mxu3 %v355_v37 }
  0x7c   : > { %633 = vmatmul.f32.gmra.mxu0 %v356_v38 }
  0x7d   : > { %859 = vmatmul.f32.gmra.mxu2 %v356_v38  ;;  %449 = vperm.xlu0 %1490, %v411_v39   ;;  %v381_v38 = vld [vmem:[#allocation5 + $0x118] sm:$0xff] }
  0x7e   : > { %444 = vperm.xlu2 %1492, %v410_v40   ;;  %534 = vperm.xlu1 %1491, %v428_v6   ;;  %v385_v6 = vld [vmem:[#allocation5 + $0x138] sm:$0xff] }
  0x80   : > { %746 = vmatmul.f32.gmra.mxu1 %v357_v41  ;;  %972 = vmatmul.f32.gmra.mxu3 %v357_v41 }
  0x84   : > { %636 = vmatmul.f32.gmra.mxu0 %v358_v42 }
  0x85   : > { %862 = vmatmul.f32.gmra.mxu2 %v358_v42  ;;  %529 = vperm.xlu0 %1490, %v427_v18  }
  0x86   : > { %524 = vperm.xlu1 %1491, %v426_v12  }
  0x88   : > { %749 = vmatmul.f32.gmra.mxu1 %v359_v43  ;;  %975 = vmatmul.f32.gmra.mxu3 %v359_v43  ;;  %v382_v43 = vld [vmem:[#allocation5 + $0x120] sm:$0xff] }
  0x8a   : > { %v1945_v45 = vpop.permute.xlu2 %594 }
  0x8b   : > { %2322 = vst [vmem:[#allocation13_spill] sm:$0xff] %v1945_v45 }
  0x8c   : > { %639 = vmatmul.f32.gmra.mxu0 %v360_v44 }
  0x8d   : > { %865 = vmatmul.f32.gmra.mxu2 %v360_v44 }
  0x90   : > { %752 = vmatmul.f32.gmra.mxu1 %v361_v46  ;;  %978 = vmatmul.f32.gmra.mxu3 %v361_v46 }
  0x93   : > { %v1947_v48 = vpop.permute.xlu2 %504 }
  0x94   : > { %642 = vmatmul.f32.gmra.mxu0 %v362_v47 }
  0x95   : > { %868 = vmatmul.f32.gmra.mxu2 %v362_v47  ;;  %v383_v47 = vld [vmem:[#allocation5 + $0x128] sm:$0xff] }
  0x98   : > { %755 = vmatmul.f32.gmra.mxu1 %v363_v49  ;;  %981 = vmatmul.f32.gmra.mxu3 %v363_v49 }
  0x9c   : > { %v1949_v51 = vpop.permute.xlu2 %584  ;;  %645 = vmatmul.f32.gmra.mxu0 %v364_v50 }
  0x9d   : > { %2323 = vst [vmem:[#allocation14_spill] sm:$0xff] %v1949_v51  ;;  %871 = vmatmul.f32.gmra.mxu2 %v364_v50 }
  0xa0   : > { %758 = vmatmul.f32.gmra.mxu1 %v365_v52  ;;  %984 = vmatmul.f32.gmra.mxu3 %v365_v52 }
  0xa1   : > { %v1951_v54 = vpop.permute.xlu1 %599 }
  0xa2   : > { %2324 = vst [vmem:[#allocation15_spill] sm:$0xff] %v1951_v54  ;;  %v1953_v55 = vpop.permute.xlu0 %519 }
  0xa4   : > { %648 = vmatmul.f32.gmra.mxu0 %v366_v53 }
  0xa5   : > { %874 = vmatmul.f32.gmra.mxu2 %v366_v53 }
  0xa6   : > { %v1955_v57 = vpop.permute.xlu2 %489 }
  0xa8   : > { %761 = vmatmul.f32.gmra.mxu1 %v367_v56  ;;  %987 = vmatmul.f32.gmra.mxu3 %v367_v56 }
  0xaa   : > { %v1957_v59 = vpop.permute.xlu0 %514  ;;  %v1959_v60 = vpop.permute.xlu1 %509 }
  0xac   : > { %651 = vmatmul.f32.gmra.mxu0 %v368_v58 }
  0xad   : > { %877 = vmatmul.f32.gmra.mxu2 %v368_v58 }
  0xb0   : > { %764 = vmatmul.f32.gmra.mxu1 %v369_v61  ;;  %v1961_v62 = vpop.permute.xlu2 %569  ;;  %990 = vmatmul.f32.gmra.mxu3 %v369_v61  ;;  %v384_v61 = vld [vmem:[#allocation5 + $0x130] sm:$0xff] }
  0xb1   : > { %2325 = vst [vmem:[#allocation16_spill] sm:$0xff] %v1961_v62 }
  0xb3   : > { %v1963_v0 = vpop.permute.xlu0 %589 }
  0xb4   : > { %2326 = vst [vmem:[#allocation17_spill] sm:$0xff] %v1963_v0  ;;  %654 = vmatmul.f32.gmra.mxu0 %v370_v63  ;;  %v1965_v2 = vpop.permute.xlu1 %499  ;;  %v403_v0 = vld [vmem:[#allocation5 + $0x1c8] sm:$0xff] }
  0xb5   : > { %880 = vmatmul.f32.gmra.mxu2 %v370_v63 }
  0xb8   : > { %767 = vmatmul.f32.gmra.mxu1 %v371_v1  ;;  %v1967_v3 = vpop.permute.xlu2 %474  ;;  %993 = vmatmul.f32.gmra.mxu3 %v371_v1 }
  0xbc   : > { %657 = vmatmul.f32.gmra.mxu0 %v372_v4 }
  0xbd   : > { %883 = vmatmul.f32.gmra.mxu2 %v372_v4  ;;  %v1972_v7 = vpop.permute.xlu0 %494  ;;  %v1974_v8 = vpop.permute.xlu1 %579 }
  0xbe   : > { %2327 = vst [vmem:[#allocation18_spill] sm:$0xff] %v1974_v8  ;;  %v402_v8 = vld [vmem:[#allocation5 + $0x1c0] sm:$0xff] }
  0xc0   : > { %770 = vmatmul.f32.gmra.mxu1 %v373_v5  ;;  %v1976_v9 = vpop.permute.xlu2 %554  ;;  %996 = vmatmul.f32.gmra.mxu3 %v373_v5 }
  0xc1   : > { %2328 = vst [vmem:[#allocation19_spill] sm:$0xff] %v1976_v9 }
  0xc4   : > { %660 = vmatmul.f32.gmra.mxu0 %v374_v10 }
  0xc5   : > { %886 = vmatmul.f32.gmra.mxu2 %v374_v10 }
  0xc7   : > { %v1981_v13 = vpop.permute.xlu0 %574 }
  0xc8   : > { %773 = vmatmul.f32.gmra.mxu1 %v375_v11  ;;  %2329 = vst [vmem:[#allocation20_spill] sm:$0xff] %v1981_v13  ;;  %v1983_v14 = vpop.permute.xlu2 %459  ;;  %999 = vmatmul.f32.gmra.mxu3 %v375_v11  ;;  %v1985_v15 = vpop.permute.xlu1 %484  ;;  %v401_v13 = vld [vmem:[#allocation5 + $0x1b8] sm:$0xff] }
  0xcc   : > { %663 = vmatmul.f32.gmra.mxu0 %v376_v16 }
  0xcd   : > { %889 = vmatmul.f32.gmra.mxu2 %v376_v16 }
  0xcf   : > { %v1990_v19 = vpop.permute.xlu0 %479 }
  0xd0   : > { %776 = vmatmul.f32.gmra.mxu1 %v377_v17  ;;  %v1992_v20 = vpop.permute.xlu2 %539  ;;  %1002 = vmatmul.f32.gmra.mxu3 %v377_v17  ;;  %v1994_v21 = vpop.permute.xlu1 %564 }
  0xd1   : > { %2330 = vst [vmem:[#allocation21_spill] sm:$0xff] %v1992_v20  ;;  %v619_v22 = vpop.f32.mrf.mxu0 }
  0xd2   : > { %2331 = vst [vmem:[#allocation22_spill] sm:$0xff] %v1994_v21  ;;  %v404_v21 = vld [vmem:[#allocation5 + $0x1d0] sm:$0xff] }
  0xd4   : > { %666 = vmatmul.f32.gmra.mxu0 %v378_v23 }
  0xd5   : > { %v732_v24 = vpop.f32.mrf.mxu1  ;;  %892 = vmatmul.f32.gmra.mxu2 %v378_v23 }
  0xd7   : > { %v1996_v26 = vpop.permute.xlu0 %559 }
  0xd8   : > { %779 = vmatmul.f32.gmra.mxu1 %v379_v25  ;;  %2332 = vst [vmem:[#allocation23_spill] sm:$0xff] %v1996_v26  ;;  %v445_v27 = vpop.permute.xlu2 %444  ;;  %1005 = vmatmul.f32.gmra.mxu3 %v379_v25  ;;  %v1998_v28 = vpop.permute.xlu1 %469 }
  0xd9   : > { %v620_v29 = vadd.f32 %v619_v22, %v445_v27  ;;  %v845_v30 = vpop.f32.mrf.mxu2  ;;  %v622_v32 = vpop.f32.mrf.mxu0  ;;  %v386_v22 = vld [vmem:[#allocation5 + $0x140] sm:$0xff] }
  0xda   : > { %v846_v31 = vadd.f32 %v845_v30, %v445_v27  ;;  %v387_v30 = vld [vmem:[#allocation5 + $0x148] sm:$0xff] }
  0xdb   : > { %v2000_v34 = vadd.f32 %v732_v24, %v620_v29  ;;  %v958_v35 = vpop.f32.mrf.mxu3 }
  0xdc   : > { %v2002_v36 = vadd.f32 %v958_v35, %v846_v31  ;;  %669 = vmatmul.f32.gmra.mxu0 %v380_v33  ;;  %v388_v35 = vld [vmem:[#allocation5 + $0x150] sm:$0xff] }
  0xdd   : > { %2333 = vst [vmem:[#allocation24_spill] sm:$0xff] %v2000_v34  ;;  %v735_v37 = vpop.f32.mrf.mxu1  ;;  %895 = vmatmul.f32.gmra.mxu2 %v380_v33 }
  0xde   : > { %2334 = vst [vmem:[#allocation25_spill] sm:$0xff] %v2002_v36  ;;  %v406_v36 = vld [vmem:[#allocation5 + $0x1e0] sm:$0xff] }
  0xdf   : > { %v2004_v39 = vpop.permute.xlu0 %464 }
  0xe0   : > { %782 = vmatmul.f32.gmra.mxu1 %v381_v38  ;;  %1008 = vmatmul.f32.gmra.mxu3 %v381_v38  ;;  %v2006_v40 = vpop.permute.xlu1 %549 }
  0xe1   : > { %2335 = vst [vmem:[#allocation26_spill] sm:$0xff] %v2006_v40  ;;  %v848_v41 = vpop.f32.mrf.mxu2  ;;  %v625_v42 = vpop.f32.mrf.mxu0 }
  0xe3   : > { %v961_v44 = vpop.f32.mrf.mxu3 }
  0xe4   : > { %672 = vmatmul.f32.gmra.mxu0 %v382_v43 }
  0xe5   : > { %v738_v46 = vpop.f32.mrf.mxu1  ;;  %898 = vmatmul.f32.gmra.mxu2 %v382_v43 }
  0xe7   : > { %v2008_v49 = vpop.permute.xlu0 %544 }
  0xe8   : > { %785 = vmatmul.f32.gmra.mxu1 %v383_v47  ;;  %2336 = vst [vmem:[#allocation27_spill] sm:$0xff] %v2008_v49  ;;  %1011 = vmatmul.f32.gmra.mxu3 %v383_v47  ;;  %v455_v50 = vpop.permute.xlu1 %454  ;;  %v390_v47 = vld [vmem:[#allocation5 + $0x160] sm:$0xff] }
  0xe9   : > { %v851_v52 = vpop.f32.mrf.mxu2  ;;  %v626_v53 = vadd.f32 %v625_v42, %v455_v50  ;;  %v2010_v58 = vpop.f32.mrf.mxu0  ;;  %v389_v42 = vld [vmem:[#allocation5 + $0x158] sm:$0xff] }
  0xea   : > { %v852_v56 = vadd.f32 %v851_v52, %v455_v50 }
  0xeb   : > { %v964_v63 = vpop.f32.mrf.mxu3  ;;  %v2012_v1 = vadd.f32 %v738_v46, %v626_v53 }
  0xec   : > { %v2014_v4 = vadd.f32 %v964_v63, %v852_v56  ;;  %675 = vmatmul.f32.gmra.mxu0 %v384_v61  ;;  %v391_v56 = vld [vmem:[#allocation5 + $0x168] sm:$0xff] }
  0xed   : > { %2337 = vst [vmem:[#allocation28_spill] sm:$0xff] %v2012_v1  ;;  %v2016_v5 = vpop.f32.mrf.mxu1  ;;  %901 = vmatmul.f32.gmra.mxu2 %v384_v61 }
  0xee   : > { %2338 = vst [vmem:[#allocation29_spill] sm:$0xff] %v2014_v4 }
  0xef   : > { %v450_v10 = vpop.permute.xlu0 %449 }
  0xf0   : > { %788 = vmatmul.f32.gmra.mxu1 %v385_v6  ;;  %1014 = vmatmul.f32.gmra.mxu3 %v385_v6  ;;  %v623_v11 = vadd.f32 %v622_v32, %v450_v10  ;;  %v849_v12 = vadd.f32 %v848_v41, %v450_v10  ;;  %v392_v10 = vld [vmem:[#allocation5 + $0x170] sm:$0xff]  ;;  %v2089_v4 = vpop.permute.xlu1 %534 }
  0xf1   : > { %v854_v16 = vpop.f32.mrf.mxu2  ;;  %v2019_v18 = vpop.f32.mrf.mxu0  ;;  %2346 = vst [vmem:[#allocation37_spill] sm:$0xff] %v2089_v4 }
  0xf2   : > { %v855_v17 = vadd.f32 %v854_v16, %v1983_v14  ;;  %v2021_v23 = vadd.f32 %v735_v37, %v623_v11  ;;  %v2023_v24 = vadd.f32 %v961_v44, %v849_v12 }
  0xf3   : > { %v967_v25 = vpop.f32.mrf.mxu3 }
  0xf4   : > { %2339 = vst [vmem:[#allocation30_spill] sm:$0xff] %v2021_v23  ;;  %v2025_v27 = vadd.f32 %v967_v25, %v855_v17  ;;  %678 = vmatmul.f32.gmra.mxu0 %v386_v22  ;;  %v393_v17 = vld [vmem:[#allocation5 + $0x178] sm:$0xff] }
  0xf5   : > { %2340 = vst [vmem:[#allocation31_spill] sm:$0xff] %v2023_v24  ;;  %v2027_v29 = vpop.f32.mrf.mxu1  ;;  %904 = vmatmul.f32.gmra.mxu2 %v386_v22  ;;  %v1182_v23 = vld [vmem:[%s2287_s3] sm:$0xf] }
  0xf6   : > { %2341 = vst [vmem:[#allocation32_spill] sm:$0xff] %v2025_v27 }
  0xf7   : > { %1190 = vst [vmem:[#allocation1] ss:$4 sm:$0xff] %v1182_v23  ;;  %v2103_v23 = vadd.f32 %v2010_v58, %v1983_v14 }
  0xf8   : > { %791 = vmatmul.f32.gmra.mxu1 %v387_v30  ;;  %1017 = vmatmul.f32.gmra.mxu3 %v387_v30 }
  0xf9   : > { %v857_v31 = vpop.f32.mrf.mxu2  ;;  %v2030_v33 = vpop.f32.mrf.mxu0 }
  0xfa   : > { %v858_v32 = vadd.f32 %v857_v31, %v2004_v39  ;;  %v394_v31 = vld [vmem:[#allocation5 + $0x180] sm:$0xff]  ;;  %v635_v14 = vadd.f32 %v2030_v33, %v1998_v28 }
  0xfb   : > { %v970_v37 = vpop.f32.mrf.mxu3 }
  0xfc   : > { %v2032_v38 = vadd.f32 %v970_v37, %v858_v32  ;;  %681 = vmatmul.f32.gmra.mxu0 %v388_v35 }
  0xfd   : > { %v2034_v41 = vpop.f32.mrf.mxu1  ;;  %907 = vmatmul.f32.gmra.mxu2 %v388_v35 }
  0xfe   : > { %2342 = vst [vmem:[#allocation33_spill] sm:$0xff] %v2032_v38 }
 0x100   : > { %794 = vmatmul.f32.gmra.mxu1 %v389_v42  ;;  %1020 = vmatmul.f32.gmra.mxu3 %v389_v42  ;;  %v395_v42 = vld [vmem:[#allocation5 + $0x188] sm:$0xff] }
 0x101   : > { %v860_v43 = vpop.f32.mrf.mxu2  ;;  %v2037_v46 = vpop.f32.mrf.mxu0 }
 0x102   : > { %v861_v44 = vadd.f32 %v860_v43, %v1998_v28 }
 0x103   : > { %v973_v50 = vpop.f32.mrf.mxu3 }
 0x104   : > { %v2039_v52 = vadd.f32 %v973_v50, %v861_v44  ;;  %684 = vmatmul.f32.gmra.mxu0 %v390_v47 }
 0x105   : > { %v2041_v53 = vpop.f32.mrf.mxu1  ;;  %910 = vmatmul.f32.gmra.mxu2 %v390_v47  ;;  %v396_v47 = vld [vmem:[#allocation5 + $0x190] sm:$0xff] }
 0x106   : > { %2343 = vst [vmem:[#allocation34_spill] sm:$0xff] %v2039_v52 }
 0x108   : > { %797 = vmatmul.f32.gmra.mxu1 %v391_v56  ;;  %1023 = vmatmul.f32.gmra.mxu3 %v391_v56 }
 0x109   : > { %v863_v61 = vpop.f32.mrf.mxu2  ;;  %v2044_v6 = vpop.f32.mrf.mxu0 }
 0x10a   : > { %v864_v63 = vadd.f32 %v863_v61, %v1967_v3  ;;  %v397_v61 = vld [vmem:[#allocation5 + $0x198] sm:$0xff] }
 0x10b   : > { %v976_v11 = vpop.f32.mrf.mxu3 }
 0x10c   : > { %v2046_v12 = vadd.f32 %v976_v11, %v864_v63  ;;  %687 = vmatmul.f32.gmra.mxu0 %v392_v10  ;;  %v398_v11 = vld [vmem:[#allocation5 + $0x1a0] sm:$0xff] }
 0x10d   : > { %v2048_v16 = vpop.f32.mrf.mxu1  ;;  %913 = vmatmul.f32.gmra.mxu2 %v392_v10 }
 0x10e   : > { %2344 = vst [vmem:[#allocation35_spill] sm:$0xff] %v2046_v12 }
 0x110   : > { %800 = vmatmul.f32.gmra.mxu1 %v393_v17  ;;  %1026 = vmatmul.f32.gmra.mxu3 %v393_v17 }
 0x111   : > { %v866_v22 = vpop.f32.mrf.mxu2  ;;  %v2051_v30 = vpop.f32.mrf.mxu0 }
 0x112   : > { %v867_v25 = vadd.f32 %v866_v22, %v1990_v19 }
 0x113   : > { %v979_v32 = vpop.f32.mrf.mxu3 }
 0x114   : > { %v2053_v35 = vadd.f32 %v979_v32, %v867_v25  ;;  %690 = vmatmul.f32.gmra.mxu0 %v394_v31  ;;  %v399_v25 = vld [vmem:[#allocation5 + $0x1a8] sm:$0xff] }
 0x115   : > { %v2055_v37 = vpop.f32.mrf.mxu1  ;;  %916 = vmatmul.f32.gmra.mxu2 %v394_v31 }
 0x116   : > { %2345 = vst [vmem:[#allocation36_spill] sm:$0xff] %v2053_v35 }
 0x118   : > { %803 = vmatmul.f32.gmra.mxu1 %v395_v42  ;;  %1029 = vmatmul.f32.gmra.mxu3 %v395_v42  ;;  %v400_v42 = vld [vmem:[#allocation5 + $0x1b0] sm:$0xff] }
 0x119   : > { %v2057_v43 = vpop.f32.mrf.mxu2  ;;  %v2059_v44 = vpop.f32.mrf.mxu0 }
 0x11b   : > { %v2061_v50 = vpop.f32.mrf.mxu3 }
 0x11c   : > { %693 = vmatmul.f32.gmra.mxu0 %v396_v47 }
 0x11d   : > { %v2063_v56 = vpop.f32.mrf.mxu1  ;;  %919 = vmatmul.f32.gmra.mxu2 %v396_v47  ;;  %v1183_v47 = vld [vmem:[%s2288_s4] sm:$0x3] }
 0x11e   : > { %1186 = vperm.xlu2 %1492, %v1183_v47  }
 0x120   : > { %806 = vmatmul.f32.gmra.mxu1 %v397_v61  ;;  %1032 = vmatmul.f32.gmra.mxu3 %v397_v61 }
 0x121   : > { %v2065_v63 = vpop.f32.mrf.mxu2  ;;  %v2067_v10 = vpop.f32.mrf.mxu0 }
 0x123   : > { %v2069_v17 = vpop.f32.mrf.mxu3 }
 0x124   : > { %696 = vmatmul.f32.gmra.mxu0 %v398_v11 }
 0x125   : > { %v2071_v22 = vpop.f32.mrf.mxu1  ;;  %922 = vmatmul.f32.gmra.mxu2 %v398_v11 }
 0x128   : > { %809 = vmatmul.f32.gmra.mxu1 %v399_v25  ;;  %1035 = vmatmul.f32.gmra.mxu3 %v399_v25 }
 0x129   : > { %v2073_v31 = vpop.f32.mrf.mxu2  ;;  %v652_v32 = vpop.f32.mrf.mxu0 }
 0x12b   : > { %v2078_v61 = vpop.f32.mrf.mxu3 }
 0x12c   : > { %699 = vmatmul.f32.gmra.mxu0 %v400_v42 }
 0x12d   : > { %v2080_v62 = vpop.f32.mrf.mxu1  ;;  %925 = vmatmul.f32.gmra.mxu2 %v400_v42 }
 0x130   : > { %812 = vmatmul.f32.gmra.mxu1 %v401_v13  ;;  %1038 = vmatmul.f32.gmra.mxu3 %v401_v13  ;;  %v405_v13 = vld [vmem:[#allocation5 + $0x1d8] sm:$0xff] }
 0x131   : > { %v2082_v11 = vpop.f32.mrf.mxu2  ;;  %v655_v25 = vpop.f32.mrf.mxu0 }
 0x132   : > { %v879_v28 = vadd.f32 %v2082_v11, %v1965_v2 }
 0x133   : > { %v2084_v51 = vpop.f32.mrf.mxu3 }
 0x134   : > { %702 = vmatmul.f32.gmra.mxu0 %v402_v8 }
 0x135   : > { %v768_v54 = vpop.f32.mrf.mxu1  ;;  %928 = vmatmul.f32.gmra.mxu2 %v402_v8  ;;  %v407_v8 = vld [vmem:[#allocation5 + $0x1e8] sm:$0xff] }
 0x138   : > { %815 = vmatmul.f32.gmra.mxu1 %v403_v0  ;;  %1041 = vmatmul.f32.gmra.mxu3 %v403_v0 }
 0x139   : > { %v881_v47 = vpop.f32.mrf.mxu2  ;;  %v658_v45 = vpop.f32.mrf.mxu0 }
 0x13a   : > { %v882_v58 = vadd.f32 %v881_v47, %v1947_v48 }
 0x13b   : > { %v2086_v26 = vpop.f32.mrf.mxu3 }
 0x13c   : > { %705 = vmatmul.f32.gmra.mxu0 %v404_v21 }
 0x13d   : > { %v771_v42 = vpop.f32.mrf.mxu1  ;;  %931 = vmatmul.f32.gmra.mxu2 %v404_v21  ;;  %v659_v21 = vadd.f32 %v658_v45, %v1959_v60 }
 0x13f   : > { %v772_v45 = vadd.f32 %v771_v42, %v659_v21  ;;  %v525_v42 = vpop.permute.xlu1 %524 }
 0x140   : > { %818 = vmatmul.f32.gmra.mxu1 %v405_v13  ;;  %1044 = vmatmul.f32.gmra.mxu3 %v405_v13  ;;  %v408_v13 = vld [vmem:[#allocation5 + $0x1f0] sm:$0xff] }
 0x141   : > { %v884_v9 = vpop.f32.mrf.mxu2  ;;  %v661_v40 = vpop.f32.mrf.mxu0 }
 0x142   : > { %v662_v0 = vadd.f32 %v661_v40, %v1957_v59  ;;  %v653_v40 = vadd.f32 %v652_v32, %v1965_v2  ;;  %v647_v32 = vadd.f32 %v2059_v44, %v1955_v57 }
 0x143   : > { %v997_v49 = vpop.f32.mrf.mxu3 }
 0x144   : > { %708 = vmatmul.f32.gmra.mxu0 %v406_v36 }
 0x145   : > { %v774_v24 = vpop.f32.mrf.mxu1  ;;  %934 = vmatmul.f32.gmra.mxu2 %v406_v36  ;;  %v656_v36 = vadd.f32 %v655_v25, %v1947_v48  ;;  %v766_v25 = vadd.f32 %v2080_v62, %v653_v40  ;;  %v641_v62 = vadd.f32 %v2044_v6, %v1990_v19 }
 0x146   : > { %v775_v34 = vadd.f32 %v774_v24, %v662_v0 }
 0x147   : > { %v769_v35 = vadd.f32 %v768_v54, %v656_v36  ;;  %v1076_v19 = vmax.f32 %v766_v25, 0.0  ;;  %v992_v36 = vadd.f32 %v2084_v51, %v879_v28  ;;  %v632_v51 = vadd.f32 %v2019_v18, %v2004_v39 }
 0x148   : > { %821 = vmatmul.f32.gmra.mxu1 %v407_v8  ;;  %1047 = vmatmul.f32.gmra.mxu3 %v407_v8  ;;  %v409_v8 = vld [vmem:[#allocation5 + $0x1f8] sm:$0xff]  ;;  %v1082_v24 = vmax.f32 %v775_v34, 0.0  ;;  %v885_v34 = vadd.f32 %v884_v9, %v1959_v60  ;;  %v644_v60 = vadd.f32 %v2051_v30, %v1985_v15 }
 0x149   : > { %v887_v27 = vpop.f32.mrf.mxu2  ;;  %v664_v38 = vpop.f32.mrf.mxu0 }
 0x14a   : > { %v665_v20 = vadd.f32 %v664_v38, %v1953_v55  ;;  %v888_v12 = vadd.f32 %v887_v27, %v1957_v59  ;;  %v650_v38 = vadd.f32 %v2067_v10, %v1972_v7  ;;  %v1080_v59 = vmax.f32 %v772_v45, 0.0 }
 0x14b   : > { %v1000_v52 = vpop.f32.mrf.mxu3  ;;  %v1146_v10 = vmin.f32 %v1082_v24, 6.0  ;;  %v998_v48 = vadd.f32 %v997_v49, %v885_v34  ;;  %v757_v2 = vadd.f32 %v2055_v37, %v644_v60  ;;  %v1140_v24 = vmin.f32 %v1076_v19, 6.0  ;;  %v530_v37 = vpop.permute.xlu0 %529 }
 0x14c   : > { %711 = vmatmul.f32.gmra.mxu0 %v408_v13  ;;  %v1001_v21 = vadd.f32 %v1000_v52, %v888_v12  ;;  %v763_v9 = vadd.f32 %v2071_v22, %v650_v38  ;;  %v760_v12 = vadd.f32 %v2063_v56, %v647_v32  ;;  %v1144_v6 = vmin.f32 %v1080_v59, 6.0 }
 0x14d   : > { %v777_v1 = vpop.f32.mrf.mxu1  ;;  %937 = vmatmul.f32.gmra.mxu2 %v408_v13  ;;  %v995_v22 = vadd.f32 %v2086_v26, %v882_v58  ;;  %v873_v56 = vadd.f32 %v2065_v63, %v1955_v57  ;;  %v1081_v40 = vmax.f32 %v998_v48, 0.0 }
 0x14e   : > { %v778_v0 = vadd.f32 %v777_v1, %v665_v20  ;;  %v1083_v47 = vmax.f32 %v1001_v21, 0.0  ;;  %v1074_v49 = vmax.f32 %v763_v9, 0.0  ;;  %v1072_v26 = vmax.f32 %v760_v12, 0.0 }
 0x14f   : > { %v1079_v38 = vmax.f32 %v995_v22, 0.0  ;;  %v986_v34 = vadd.f32 %v2069_v17, %v873_v56  ;;  %v745_v17 = vadd.f32 %v2027_v29, %v632_v51 }
 0x150   : > { %v1084_v4 = vmax.f32 %v778_v0, 0.0  ;;  %824 = vmatmul.f32.gmra.mxu1 %v409_v8  ;;  %1050 = vmatmul.f32.gmra.mxu3 %v409_v8  ;;  %v1147_v32 = vmin.f32 %v1083_v47, 6.0 }
 0x151   : > { %v890_v20 = vpop.f32.mrf.mxu2  ;;  %v667_v27 = vpop.f32.mrf.mxu0 }
 0x152   : > { %v891_v1 = vadd.f32 %v890_v20, %v1953_v55  ;;  %v1148_v54 = vmin.f32 %v1084_v4, 6.0  ;;  %v668_v44 = vadd.f32 %v667_v27, %v525_v42  ;;  %v1078_v55 = vmax.f32 %v769_v35, 0.0 }
 0x153   : > { %v1003_v13 = vpop.f32.mrf.mxu3  ;;  %v638_v4 = vadd.f32 %v2037_v46, %v1967_v3  ;;  %v876_v35 = vadd.f32 %v2073_v31, %v1972_v7  ;;  %v754_v46 = vadd.f32 %v2048_v16, %v641_v62  ;;  %v870_v7 = vadd.f32 %v2057_v43, %v1985_v15 }
 0x154   : > { %1195 = vmatpush.msrb.mxu0 %v1148_v54  ;;  %v1004_v33 = vadd.f32 %v1003_v13, %v891_v1  ;;  %v1142_v11 = vmin.f32 %v1078_v55, 6.0  ;;  %v1138_v15 = vmin.f32 %v1074_v49, 6.0  ;;  %v1070_v43 = vmax.f32 %v757_v2, 0.0  ;;  %v2348_v13 = vld [vmem:[#allocation37_spill] sm:$0xff] }
 0x155   : > { %v780_v52 = vpop.f32.mrf.mxu1  ;;  %v989_v0 = vadd.f32 %v2078_v61, %v876_v35  ;;  %v751_v63 = vadd.f32 %v2041_v53, %v638_v4  ;;  %v1077_v20 = vmax.f32 %v992_v36, 0.0  ;;  %v1145_v1 = vmin.f32 %v1081_v40, 6.0 }
 0x156   : > { %1196 = vmatpush.msrb.mxu0 %v1146_v10  ;;  %v2123_v30 = vadd.f32 %v780_v52, %v668_v44  ;;  %v1085_v3 = vmax.f32 %v1004_v33, 0.0  ;;  %v748_v27 = vadd.f32 %v2034_v41, %v635_v14  ;;  %v1136_v54 = vmin.f32 %v1072_v26, 6.0 }
 0x157   : > { %v1068_v10 = vmax.f32 %v754_v46, 0.0  ;;  %v983_v18 = vadd.f32 %v2061_v50, %v870_v7  ;;  %v1075_v53 = vmax.f32 %v989_v0, 0.0  ;;  %v1134_v58 = vmin.f32 %v1070_v43, 6.0  ;;  %v2350_v46 = vld [vmem:[#allocation35_spill] sm:$0xff] }
 0x158   : > { %1197 = vmatpush.msrb.mxu0 %v1144_v6  ;;  %v1149_v45 = vmin.f32 %v1085_v3, 6.0  ;;  %v1066_v21 = vmax.f32 %v751_v63, 0.0  ;;  %v1073_v44 = vmax.f32 %v986_v34, 0.0  ;;  %v1141_v60 = vmin.f32 %v1077_v20, 6.0 }
 0x159   : > { %v893_v8 = vpop.f32.mrf.mxu2  ;;  %v670_v16 = vpop.f32.mrf.mxu0  ;;  %v742_v41 = vadd.f32 %v2016_v5, %v2103_v23  ;;  %v1132_v55 = vmin.f32 %v1068_v10, 6.0  ;;  %v1064_v50 = vmax.f32 %v748_v27, 0.0  ;;  %v1139_v28 = vmin.f32 %v1075_v53, 6.0  ;;  %v2349_v5 = vld [vmem:[#allocation36_spill] sm:$0xff] }
 0x15a   : > { %v894_v31 = vadd.f32 %v893_v8, %v525_v42  ;;  %1198 = vmatpush.msrb.mxu0 %v1142_v11  ;;  %1235 = vmatpush.msrb.mxu2 %v1149_v45  ;;  %v671_v57 = vadd.f32 %v670_v16, %v530_v37  ;;  %v1143_v42 = vmin.f32 %v1079_v38, 6.0  ;;  %v1071_v29 = vmax.f32 %v983_v18, 0.0  ;;  %v2351_v11 = vld [vmem:[#allocation28_spill] sm:$0xff]  ;;  %v2352_v8 = vld [vmem:[#allocation34_spill] sm:$0xff]  ;;  %v2358_v18 = vld [vmem:[#allocation29_spill] sm:$0xff] }
 0x15b   : > { %v1006_v25 = vpop.f32.mrf.mxu3  ;;  %v1130_v33 = vmin.f32 %v1066_v21, 6.0  ;;  %v1062_v52 = vmax.f32 %v745_v17, 0.0  ;;  %v1137_v6 = vmin.f32 %v1073_v44, 6.0  ;;  %v1069_v23 = vmax.f32 %v2349_v5, 0.0  ;;  %v2353_v16 = vld [vmem:[#allocation30_spill] sm:$0xff]  ;;  %v2359_v44 = vld [vmem:[#allocation31_spill] sm:$0xff] }
 0x15c   : > { %1199 = vmatpush.msrb.mxu0 %v1140_v24  ;;  %v2140_v59 = vadd.f32 %v1006_v25, %v894_v31  ;;  %1236 = vmatpush.msrb.mxu2 %v1147_v32  ;;  %v1128_v22 = vmin.f32 %v1064_v50, 6.0  ;;  %v1060_v47 = vmax.f32 %v742_v41, 0.0  ;;  %v1135_v3 = vmin.f32 %v1071_v29, 6.0  ;;  %v2355_v32 = vld [vmem:[#allocation33_spill] sm:$0xff]  ;;  %v2356_v25 = vld [vmem:[#allocation24_spill] sm:$0xff] }
 0x15d   : > { %v783_v61 = vpop.f32.mrf.mxu1  ;;  %v1067_v2 = vmax.f32 %v2350_v46, 0.0  ;;  %v1126_v49 = vmin.f32 %v1062_v52, 6.0  ;;  %v1058_v56 = vmax.f32 %v2351_v11, 0.0  ;;  %v1133_v40 = vmin.f32 %v1069_v23, 6.0  ;;  %v2361_v50 = vld [vmem:[#allocation25_spill] sm:$0xff]  ;;  %v2362_v23 = vld [vmem:[#allocation26_spill] sm:$0xff] }
 0x15e   : > { %2347 = vst [vmem:[#allocation38_spill] sm:$0xff] %v2140_v59  ;;  %1200 = vmatpush.msrb.mxu0 %v1138_v15  ;;  %v2143_v39 = vadd.f32 %v783_v61, %v671_v57  ;;  %1237 = vmatpush.msrb.mxu2 %v1145_v1  ;;  %v1065_v45 = vmax.f32 %v2352_v8, 0.0  ;;  %v1124_v31 = vmin.f32 %v1060_v47, 6.0  ;;  %v1056_v24 = vmax.f32 %v2353_v16, 0.0  ;;  %v2357_v61 = vld [vmem:[#allocation32_spill] sm:$0xff] }
 0x15f   : > { %v1131_v38 = vmin.f32 %v1067_v2, 6.0  ;;  %v1063_v57 = vmax.f32 %v2355_v32, 0.0  ;;  %v1122_v63 = vmin.f32 %v1058_v56, 6.0  ;;  %v1054_v15 = vmax.f32 %v2356_v25, 0.0 }
 0x160   : > { %1201 = vmatpush.msrb.mxu0 %v1136_v54  ;;  %1238 = vmatpush.msrb.mxu2 %v1143_v42  ;;  %v1129_v20 = vmin.f32 %v1065_v45, 6.0  ;;  %v1061_v1 = vmax.f32 %v2357_v61, 0.0  ;;  %v1120_v54 = vmin.f32 %v1056_v24, 6.0  ;;  %v1059_v53 = vmax.f32 %v2358_v18, 0.0 }
 0x161   : > { %v896_v62 = vpop.f32.mrf.mxu2  ;;  %v673_v9 = vpop.f32.mrf.mxu0  ;;  %v1127_v10 = vmin.f32 %v1063_v57, 6.0  ;;  %v1118_v42 = vmin.f32 %v1054_v15, 6.0  ;;  %v1191_v17 = vld.sshfl [vmem:[#allocation1] sm:$0xff pattern:$0x73625140] }
 0x162   : > { %v897_v14 = vadd.f32 %v896_v62, %v530_v37  ;;  %1202 = vmatpush.msrb.mxu0 %v1134_v58  ;;  %1239 = vmatpush.msrb.mxu2 %v1141_v60  ;;  %v674_v4 = vadd.f32 %v673_v9, %v2348_v13  ;;  %v2354_v37 = vld [vmem:[#allocation21_spill] sm:$0xff]  ;;  %v1125_v21 = vmin.f32 %v1061_v1, 6.0  ;;  %v1057_v62 = vmax.f32 %v2359_v44, 0.0 }
 0x163   : > { %v1009_v48 = vpop.f32.mrf.mxu3 }
 0x164   : > { %1203 = vmatpush.msrb.mxu0 %v1132_v55  ;;  %v2150_v12 = vadd.f32 %v1009_v48, %v897_v14  ;;  %1240 = vmatpush.msrb.mxu2 %v1139_v28  ;;  %v2360_v14 = vld [vmem:[#allocation27_spill] sm:$0xff]  ;;  %v1123_v55 = vmin.f32 %v1059_v53, 6.0  ;;  %v1121_v48 = vmin.f32 %v1057_v62, 6.0 }
 0x165   : > { %v786_v19 = vpop.f32.mrf.mxu1 }
 0x166   : > { %v2153_v35 = vadd.f32 %v786_v19, %v674_v4  ;;  %1204 = vmatpush.msrb.mxu0 %v1130_v33  ;;  %1241 = vmatpush.msrb.mxu2 %v1137_v6 }
 0x168   : > { %1205 = vmatpush.msrb.mxu0 %v1128_v22  ;;  %1242 = vmatpush.msrb.mxu2 %v1135_v3 }
 0x169   : > { %v899_v36 = vpop.f32.mrf.mxu2  ;;  %v676_v26 = vpop.f32.mrf.mxu0 }
 0x16a   : > { %v900_v7 = vadd.f32 %v899_v36, %v2348_v13  ;;  %1206 = vmatpush.msrb.mxu0 %v1126_v49  ;;  %1243 = vmatpush.msrb.mxu2 %v1133_v40  ;;  %v677_v0 = vadd.f32 %v676_v26, %v2354_v37  ;;  %v1055_v13 = vmax.f32 %v2361_v50, 0.0  ;;  %v2363_v36 = vld [vmem:[#allocation19_spill] sm:$0xff] }
 0x16b   : > { %v1012_v51 = vpop.f32.mrf.mxu3 }
 0x16c   : > { %1207 = vmatpush.msrb.mxu0 %v1124_v31  ;;  %v2163_v43 = vadd.f32 %v1012_v51, %v900_v7  ;;  %1244 = vmatpush.msrb.mxu2 %v1131_v38  ;;  %v1119_v52 = vmin.f32 %v1055_v13, 6.0 }
 0x16d   : > { %v789_v34 = vpop.f32.mrf.mxu1 }
 0x16e   : > { %v2166_v27 = vadd.f32 %v789_v34, %v677_v0  ;;  %1208 = vmatpush.msrb.mxu0 %v1122_v63  ;;  %1245 = vmatpush.msrb.mxu2 %v1129_v20  ;;  %v2365_v34 = vld [vmem:[#allocation22_spill] sm:$0xff] }
 0x170   : > { %1209 = vmatpush.msrb.mxu0 %v1120_v54  ;;  %1246 = vmatpush.msrb.mxu2 %v1127_v10 }
 0x171   : > { %v902_v58 = vpop.f32.mrf.mxu2  ;;  %v679_v41 = vpop.f32.mrf.mxu0 }
 0x172   : > { %v903_v60 = vadd.f32 %v902_v58, %v2354_v37  ;;  %1210 = vmatpush.msrb.mxu0 %v1118_v42  ;;  %1247 = vmatpush.msrb.mxu2 %v1125_v21  ;;  %v680_v9 = vadd.f32 %v679_v41, %v2360_v14  ;;  %v2364_v37 = vld [vmem:[#allocation23_spill] sm:$0xff] }
 0x173   : > { %1211 = vmatmul.f32.vlgmr.msrb.gmra.mxu0 %v1191_v17  ;;  %v1015_v4 = vpop.f32.mrf.mxu3 }
 0x174   : > { %v2173_v28 = vadd.f32 %v1015_v4, %v903_v60  ;;  %1248 = vmatpush.msrb.mxu2 %v1123_v55 }
 0x175   : > { %v792_v29 = vpop.f32.mrf.mxu1 }
 0x176   : > { %v2175_v33 = vadd.f32 %v792_v29, %v680_v9  ;;  %1249 = vmatpush.msrb.mxu2 %v1121_v48 }
 0x178   : > { %1250 = vmatpush.msrb.mxu2 %v1119_v52 }
 0x179   : > { %v905_v19 = vpop.f32.mrf.mxu2  ;;  %1251 = vmatmul.f32.vlgmr.msrb.gmra.mxu2 %v1191_v17  ;;  %v682_v5 = vpop.f32.mrf.mxu0 }
 0x17a   : > { %v906_v6 = vadd.f32 %v905_v19, %v2360_v14  ;;  %v683_v22 = vadd.f32 %v682_v5, %v2362_v23 }
 0x17b   : > { %v1018_v47 = vpop.f32.mrf.mxu3 }
 0x17c   : > { %v2179_v3 = vadd.f32 %v1018_v47, %v906_v6 }
 0x17d   : > { %v795_v46 = vpop.f32.mrf.mxu1 }
 0x17e   : > { %v2181_v2 = vadd.f32 %v795_v46, %v683_v22 }
 0x181   : > { %v908_v49 = vpop.f32.mrf.mxu2  ;;  %v685_v56 = vpop.f32.mrf.mxu0 }
 0x182   : > { %v909_v11 = vadd.f32 %v908_v49, %v2362_v23  ;;  %v686_v40 = vadd.f32 %v685_v56, %v2363_v36  ;;  %v2366_v49 = vld [vmem:[#allocation13_spill] sm:$0xff] }
 0x183   : > { %v1021_v8 = vpop.f32.mrf.mxu3 }
 0x184   : > { %v2185_v45 = vadd.f32 %v1021_v8, %v909_v11 }
 0x185   : > { %v798_v7 = vpop.f32.mrf.mxu1 }
 0x186   : > { %v2187_v26 = vadd.f32 %v798_v7, %v686_v40  ;;  %v2368_v7 = vld [vmem:[#allocation15_spill] sm:$0xff] }
 0x189   : > { %v911_v31 = vpop.f32.mrf.mxu2  ;;  %v688_v24 = vpop.f32.mrf.mxu0 }
 0x18a   : > { %v912_v16 = vadd.f32 %v911_v31, %v2363_v36  ;;  %v689_v0 = vadd.f32 %v688_v24, %v2364_v37  ;;  %v2367_v36 = vld [vmem:[#allocation17_spill] sm:$0xff] }
 0x18b   : > { %v1024_v38 = vpop.f32.mrf.mxu3 }
 0x18c   : > { %v2191_v32 = vadd.f32 %v1024_v38, %v912_v16  ;;  %v2369_v16 = vld [vmem:[#allocation14_spill] sm:$0xff] }
 0x18d   : > { %v801_v57 = vpop.f32.mrf.mxu1 }
 0x18e   : > { %v2193_v51 = vadd.f32 %v801_v57, %v689_v0  ;;  %v2370_v57 = vld [vmem:[#allocation18_spill] sm:$0xff] }
 0x191   : > { %v914_v63 = vpop.f32.mrf.mxu2  ;;  %v691_v15 = vpop.f32.mrf.mxu0 }
 0x192   : > { %v915_v25 = vadd.f32 %v914_v63, %v2364_v37  ;;  %v692_v20 = vadd.f32 %v691_v15, %v2365_v34 }
 0x193   : > { %v1027_v61 = vpop.f32.mrf.mxu3 }
 0x194   : > { %v2197_v1 = vadd.f32 %v1027_v61, %v915_v25 }
 0x195   : > { %v804_v54 = vpop.f32.mrf.mxu1 }
 0x196   : > { %v2199_v10 = vadd.f32 %v804_v54, %v692_v20  ;;  %v2371_v20 = vld [vmem:[#allocation20_spill] sm:$0xff] }
 0x199   : > { %v917_v18 = vpop.f32.mrf.mxu2  ;;  %v694_v42 = vpop.f32.mrf.mxu0 }
 0x19a   : > { %v918_v53 = vadd.f32 %v917_v18, %v2365_v34 }
 0x19b   : > { %v1030_v17 = vpop.f32.mrf.mxu3 }
 0x19c   : > { %v2202_v58 = vadd.f32 %v1030_v17, %v918_v53  ;;  %v2372_v17 = vld [vmem:[#allocation16_spill] sm:$0xff] }
 0x19d   : > { %v807_v21 = vpop.f32.mrf.mxu1 }
 0x1a1   : > { %v2204_v44 = vpop.f32.mrf.mxu2  ;;  %v697_v62 = vpop.f32.mrf.mxu0 }
 0x1a2   : > { %v698_v61 = vadd.f32 %v697_v62, %v2371_v20 }
 0x1a3   : > { %v2206_v60 = vpop.f32.mrf.mxu3 }
 0x1a5   : > { %v810_v41 = vpop.f32.mrf.mxu1 }
 0x1a9   : > { %v923_v14 = vpop.f32.mrf.mxu2  ;;  %v700_v9 = vpop.f32.mrf.mxu0 }
 0x1aa   : > { %v701_v63 = vadd.f32 %v700_v9, %v2370_v57 }
 0x1ab   : > { %v2208_v55 = vpop.f32.mrf.mxu3 }
 0x1ad   : > { %v813_v50 = vpop.f32.mrf.mxu1 }
 0x1b1   : > { %v926_v13 = vpop.f32.mrf.mxu2  ;;  %v703_v4 = vpop.f32.mrf.mxu0 }
 0x1b2   : > { %v704_v24 = vadd.f32 %v703_v4, %v2369_v16  ;;  %v814_v4 = vadd.f32 %v813_v50, %v701_v63 }
 0x1b3   : > { %v1039_v29 = vpop.f32.mrf.mxu3 }
 0x1b5   : > { %v816_v48 = vpop.f32.mrf.mxu1 }
 0x1b6   : > { %v817_v54 = vadd.f32 %v816_v48, %v704_v24  ;;  %v927_v48 = vadd.f32 %v926_v13, %v2370_v57 }
 0x1b9   : > { %v929_v52 = vpop.f32.mrf.mxu2  ;;  %v706_v19 = vpop.f32.mrf.mxu0 }
 0x1ba   : > { %v707_v40 = vadd.f32 %v706_v19, %v2367_v36  ;;  %v695_v19 = vadd.f32 %v694_v42, %v2372_v17  ;;  %v930_v9 = vadd.f32 %v929_v52, %v2369_v16  ;;  %v1040_v16 = vadd.f32 %v1039_v29, %v927_v48 }
 0x1bb   : > { %v1042_v6 = vpop.f32.mrf.mxu3  ;;  %v1100_v29 = vmax.f32 %v2193_v51, 0.0 }
 0x1bc   : > { %v808_v24 = vadd.f32 %v807_v21, %v695_v19  ;;  %v1103_v19 = vmax.f32 %v2202_v58, 0.0  ;;  %v1090_v58 = vmax.f32 %v2153_v35, 0.0  ;;  %v1093_v35 = vmax.f32 %v2173_v28, 0.0 }
 0x1bd   : > { %v819_v5 = vpop.f32.mrf.mxu1 }
 0x1be   : > { %v820_v25 = vadd.f32 %v819_v5, %v707_v40  ;;  %v811_v40 = vadd.f32 %v810_v41, %v698_v61 }
 0x1c0   : > { %v1106_v52 = vmax.f32 %v811_v40, 0.0 }
 0x1c1   : > { %v932_v23 = vpop.f32.mrf.mxu2  ;;  %v709_v22 = vpop.f32.mrf.mxu0 }
 0x1c2   : > { %v710_v11 = vadd.f32 %v709_v22, %v2366_v49  ;;  %v933_v22 = vadd.f32 %v932_v23, %v2367_v36  ;;  %v1108_v23 = vmax.f32 %v814_v4, 0.0  ;;  %v924_v36 = vadd.f32 %v923_v14, %v2371_v20 }
 0x1c3   : > { %v1045_v47 = vpop.f32.mrf.mxu3  ;;  %v1101_v4 = vmax.f32 %v2197_v1, 0.0 }
 0x1c4   : > { %v1172_v21 = vmin.f32 %v1108_v23, 6.0  ;;  %v1037_v57 = vadd.f32 %v2208_v55, %v924_v36  ;;  %v1098_v55 = vmax.f32 %v2187_v26, 0.0  ;;  %v1157_v23 = vmin.f32 %v1093_v35, 6.0 }
 0x1c5   : > { %v822_v46 = vpop.f32.mrf.mxu1  ;;  %v1165_v40 = vmin.f32 %v1101_v4, 6.0 }
 0x1c6   : > { %v823_v37 = vadd.f32 %v822_v46, %v710_v11  ;;  %v1112_v46 = vmax.f32 %v820_v25, 0.0  ;;  %v1170_v25 = vmin.f32 %v1106_v52, 6.0  ;;  %v1107_v61 = vmax.f32 %v1037_v57, 0.0 }
 0x1c8   : > { %v1114_v18 = vmax.f32 %v823_v37, 0.0  ;;  %v1176_v50 = vmin.f32 %v1112_v46, 6.0  ;;  %v1171_v51 = vmin.f32 %v1107_v61, 6.0  ;;  %v1092_v46 = vmax.f32 %v2166_v27, 0.0 }
 0x1c9   : > { %v935_v56 = vpop.f32.mrf.mxu2  ;;  %v712_v8 = vpop.f32.mrf.mxu0  ;;  %v1095_v27 = vmax.f32 %v2179_v3, 0.0  ;;  %v1192_v3 = vld.sshfl [vmem:[#allocation1 + $0x8] sm:$0xff pattern:$0x73625140] }
 0x1ca   : > { %v713_v31 = vadd.f32 %v712_v8, %v2368_v7  ;;  %v936_v34 = vadd.f32 %v935_v56, %v2366_v49  ;;  %v1110_v49 = vmax.f32 %v817_v54, 0.0  ;;  %v1178_v62 = vmin.f32 %v1114_v18, 6.0 }
 0x1cb   : > { %v1048_v0 = vpop.f32.mrf.mxu3  ;;  %v1156_v1 = vmin.f32 %v1092_v46, 6.0 }
 0x1cc   : > { %v1049_v5 = vadd.f32 %v1048_v0, %v936_v34  ;;  %v1174_v41 = vmin.f32 %v1110_v49, 6.0  ;;  %v1109_v34 = vmax.f32 %v1040_v16, 0.0  ;;  %v1088_v49 = vmax.f32 %v2143_v39, 0.0 }
 0x1cd   : > { %v825_v38 = vpop.f32.mrf.mxu1 }
 0x1ce   : > { %v826_v15 = vadd.f32 %v825_v38, %v713_v31  ;;  %v1046_v31 = vadd.f32 %v1045_v47, %v933_v22  ;;  %v1115_v37 = vmax.f32 %v1049_v5, 0.0  ;;  %v1104_v47 = vmax.f32 %v808_v24, 0.0 }
 0x1cf   : > { %v1094_v22 = vmax.f32 %v2175_v33, 0.0  ;;  %v1097_v33 = vmax.f32 %v2185_v45, 0.0  ;;  %v1152_v45 = vmin.f32 %v1088_v49, 6.0  ;;  %v1089_v24 = vmax.f32 %v2150_v12, 0.0 }
 0x1d0   : > { %v1116_v53 = vmax.f32 %v826_v15, 0.0  ;;  %v1113_v0 = vmax.f32 %v1046_v31, 0.0  ;;  %v1179_v14 = vmin.f32 %v1115_v37, 6.0  ;;  %v1168_v20 = vmin.f32 %v1104_v47, 6.0  ;;  %v1187_v37 = vpop.permute.xlu2 %1186 }
 0x1d1   : > { %v938_v8 = vpop.f32.mrf.mxu2  ;;  %v1158_v5 = vmin.f32 %v1094_v22, 6.0  ;;  %v1161_v48 = vmin.f32 %v1097_v33, 6.0  ;;  %v1091_v31 = vmax.f32 %v2163_v43, 0.0  ;;  %v1153_v36 = vmin.f32 %v1089_v24, 6.0 }
 0x1d2   : > { %v939_v11 = vadd.f32 %v938_v8, %v2368_v7  ;;  %v1180_v59 = vmin.f32 %v1116_v53, 6.0  ;;  %v1043_v7 = vadd.f32 %v1042_v6, %v930_v9  ;;  %v1102_v6 = vmax.f32 %v2199_v10, 0.0 }
 0x1d3   : > { %v1051_v56 = vpop.f32.mrf.mxu3  ;;  %v1173_v10 = vmin.f32 %v1109_v34, 6.0  ;;  %v1162_v8 = vmin.f32 %v1098_v55, 6.0  ;;  %v1167_v9 = vmin.f32 %v1103_v19, 6.0 }
 0x1d4   : > { %1215 = vmatpush.msrb.mxu1 %v1180_v59  ;;  %v1052_v42 = vadd.f32 %v1051_v56, %v939_v11  ;;  %v921_v59 = vadd.f32 %v2204_v44, %v2372_v17  ;;  %v1111_v63 = vmax.f32 %v1043_v7, 0.0  ;;  %v1177_v44 = vmin.f32 %v1113_v0, 6.0 }
 0x1d5   : > { %v1166_v18 = vmin.f32 %v1102_v6, 6.0  ;;  %v1096_v17 = vmax.f32 %v2181_v2, 0.0  ;;  %v1099_v2 = vmax.f32 %v2191_v32, 0.0  ;;  %v1154_v32 = vmin.f32 %v1090_v58, 6.0 }
 0x1d6   : > { %1216 = vmatpush.msrb.mxu1 %v1178_v62  ;;  %v1117_v38 = vmax.f32 %v1052_v42, 0.0  ;;  %v1034_v15 = vadd.f32 %v2206_v60, %v921_v59  ;;  %v1175_v54 = vmin.f32 %v1111_v63, 6.0  ;;  %v1164_v60 = vmin.f32 %v1100_v29, 6.0 }
 0x1d7   : > { %v1160_v11 = vmin.f32 %v1096_v17, 6.0  ;;  %v1163_v56 = vmin.f32 %v1099_v2, 6.0  ;;  %v1086_v62 = vmax.f32 %v2123_v30, 0.0  ;;  %v1159_v42 = vmin.f32 %v1095_v27, 6.0  ;;  %v2373_v30 = vld [vmem:[#allocation38_spill] sm:$0xff] }
 0x1d8   : > { %1217 = vmatpush.msrb.mxu1 %v1176_v50  ;;  %v1181_v13 = vmin.f32 %v1117_v38, 6.0  ;;  %v1105_v53 = vmax.f32 %v1034_v15, 0.0  ;;  %v1087_v28 = vmax.f32 %v2373_v30, 0.0  ;;  %v1155_v50 = vmin.f32 %v1091_v31, 6.0 }
 0x1d9   : > { %v1150_v39 = vmin.f32 %v1086_v62, 6.0 }
 0x1da   : > { %1218 = vmatpush.msrb.mxu1 %v1174_v41  ;;  %1255 = vmatpush.msrb.mxu3 %v1181_v13  ;;  %v1169_v26 = vmin.f32 %v1105_v53, 6.0  ;;  %v1151_v43 = vmin.f32 %v1087_v28, 6.0 }
 0x1dc   : > { %1219 = vmatpush.msrb.mxu1 %v1172_v21  ;;  %1256 = vmatpush.msrb.mxu3 %v1179_v14 }
 0x1de   : > { %1220 = vmatpush.msrb.mxu1 %v1170_v25  ;;  %1257 = vmatpush.msrb.mxu3 %v1177_v44 }
 0x1e0   : > { %1221 = vmatpush.msrb.mxu1 %v1168_v20  ;;  %1258 = vmatpush.msrb.mxu3 %v1175_v54 }
 0x1e2   : > { %1222 = vmatpush.msrb.mxu1 %v1166_v18  ;;  %1259 = vmatpush.msrb.mxu3 %v1173_v10 }
 0x1e4   : > { %1223 = vmatpush.msrb.mxu1 %v1164_v60  ;;  %1260 = vmatpush.msrb.mxu3 %v1171_v51 }
 0x1e6   : > { %1224 = vmatpush.msrb.mxu1 %v1162_v8  ;;  %1261 = vmatpush.msrb.mxu3 %v1169_v26 }
 0x1e8   : > { %1225 = vmatpush.msrb.mxu1 %v1160_v11  ;;  %1262 = vmatpush.msrb.mxu3 %v1167_v9 }
 0x1ea   : > { %1226 = vmatpush.msrb.mxu1 %v1158_v5  ;;  %1263 = vmatpush.msrb.mxu3 %v1165_v40 }
 0x1ec   : > { %1227 = vmatpush.msrb.mxu1 %v1156_v1  ;;  %1264 = vmatpush.msrb.mxu3 %v1163_v56 }
 0x1ee   : > { %1228 = vmatpush.msrb.mxu1 %v1154_v32  ;;  %1265 = vmatpush.msrb.mxu3 %v1161_v48 }
 0x1f0   : > { %1229 = vmatpush.msrb.mxu1 %v1152_v45  ;;  %1266 = vmatpush.msrb.mxu3 %v1159_v42  ;;  %v1212_v38 = vpop.f32.mrf.mxu0 }
 0x1f1   : > { %v1213_v59 = vadd.f32 %v1212_v38, %v1187_v37 }
 0x1f2   : > { %1230 = vmatpush.msrb.mxu1 %v1150_v39  ;;  %1267 = vmatpush.msrb.mxu3 %v1157_v23 }
 0x1f3   : > { %1231 = vmatmul.f32.vlgmr.msrb.gmra.mxu1 %v1192_v3 }
 0x1f4   : > { %1268 = vmatpush.msrb.mxu3 %v1155_v50 }
 0x1f6   : > { %1269 = vmatpush.msrb.mxu3 %v1153_v36 }
 0x1f8   : > { %1270 = vmatpush.msrb.mxu3 %v1151_v43 }
 0x1f9   : > { %1271 = vmatmul.f32.vlgmr.msrb.gmra.mxu3 %v1192_v3 }
 0x1fc   : > { %v1252_v7 = vpop.f32.mrf.mxu2 }
 0x1fd   : > { %v1253_v12 = vadd.f32 %v1252_v7, %v1187_v37 }
 0x270   : > { %v1232_v52 = vpop.f32.mrf.mxu1 }
 0x271   : > { %v1233_v0 = vadd.f32 %v1232_v52, %v1213_v59 }
 0x27c   : > { %v1272_v41 = vpop.f32.mrf.mxu3 }
 0x27d   : > { %v1273_v16 = vadd.f32 %v1272_v41, %v1253_v12 }
 0x27f   : > { %v1277_v13 = vrot.slane %v1273_v16, 6 }
 0x281   : > { %v1279_v47 = vsel %vm1278_vm0, %v1233_v0, %v1277_v13 }
 0x282   : > { %1281 = vst [vmem:[%s279_s13] sm:$0xf] %v1279_v47 }
 0x283   : > { %1580 = shalt.err (!%p1577_p0)
}
 0x284   : > { %1420 = dma.vmem_to_hbm [thread:$0]  (%p1757_p5), %s1299_s15, 64, %s1301_s24, %s1283_s21  }
 0x285 PF: > { %s2374_s14 = sld [smem:[#allocation11_spill]]  ;;  %s1312_s1 = sand.u32 1, %s1619_s18  }
 0x286   : > { %p1431_p3 = pnand %p1399_p11, %p1724_p6  ;;  %s1313_s23 = scalar_lea.sflag [#allocation4], %s1312_s1 }
 0x288   : > { %p1432_p7 = pneg %p1431_p3 }
 0x28a   : > { %1614 = dma.done.wait (%p1432_p7), %s1313_s23, 64  }
 0x28b   : > { %1616 = vsyncadd (%p1432_p7), %s1313_s23, 4294967232  ;;  %s22_s23 = sadd.s32 1, %s2374_s14   ;;  %s2375_s16 = sld [smem:[#allocation12_spill]] }
 0x28c   : > { %p19_p9 = scmp.ge.s32.totalorder %s22_s23, 4   ;;  %s2376_s18 = smov %s1623_s19 }
 0x28d   : > { %s2377_s19 = smov %s1627_s20  ;;  %s2378_s20 = smov %s1766_s30 }
 0x28e   : > { %s2379_s21 = smov %s1635_s22  ;;  %21 = sbr.rel (!%p19_p9) target bundleno = 9 (0x9), region = 89 }
 0x291   : > { %s2380_s22 = smov %s2375_s16 }
 0x293   :  { %1319 = vsyncpa [#allocation3], 1 }
 0x294   :  { %1321 = vsyncpa [#allocation3 + $0x1], 1 }
 0x295   :  { %1322 = vsyncpa [#allocation6], 1 }
 0x296   :  { %1323 = vsyncpa [#allocation4], 1 }
 0x297   :  { %1325 = vsyncpa [#allocation4 + $0x1], 1 }

</bundles_post_ra>
